<compile_context>
chip_gen: v6e
topology: v6e:2x2x1
jax: 0.10.0
libtpu: 0.0.40
codegen_flags: <defaults>
</compile_context>

<pallas_src>
import jax
import jax.numpy as jnp
from jax import lax
from jax.experimental import pallas as pl
from jax.experimental.pallas import tpu as pltpu

C1 = 32        # conv1 output channels (stored unpadded; masked store is ~16 KB/img)
C2 = 64        # conv2 output channels (stored unpadded; halves the FC K)
FC_N_PAD = 128  # lane-dense padding of the 10 logits


# --------------------- conv1: 3x3 (Cin=1) + ReLU + maxpool ------------------ #

def _conv1_kernel(x_ref, w_ref, b_ref, o_ref, m_ref):
    """Whole image per grid step; writes the PRE-PADDED pooled activation.

    x_ref: (1, H+2, Wp, 1)        f32 zero-padded NHWC image (Wp % 8 == 0)
    w_ref: (9, C1)                f32 taps, row = kh*3 + kw
    b_ref: (1, C1)                f32
    o_ref: (1, Ho+2, Wo+2, C1)    bf16 pooled output, 1-px zero border for conv2
    m_ref: (W+4, C1)              f32 scratch (2-row zero margins -> width border)
    """
    Wp = x_ref.shape[2]
    _, Hop2, Wop2, Cout = o_ref.shape
    Ho, Wo = Hop2 - 2, Wop2 - 2
    W = 2 * Wo

    # Loop-invariant operands, broadcast ONCE outside the row loop.
    wks = [jnp.broadcast_to(w_ref[pl.ds(t, 1), :], (W, Cout)) for t in range(9)]
    bias = jnp.broadcast_to(b_ref[...], (W, Cout))

    # Height border rows of the pre-padded output.
    zrow = jnp.zeros((Wop2, Cout), o_ref.dtype)
    o_ref[0, 0, :, :] = zrow
    o_ref[0, Hop2 - 1, :, :] = zrow
    # Width border comes from the pooling scratch: rows 0,1 and W+2,W+3 stay 0.
    m_ref[...] = jnp.zeros_like(m_ref)

    def row_body(r, carry):
        row0 = 2 * r
        # Load each padded input row ONCE, lane-broadcast ONCE, derive the 3 kw
        # taps with XLU sublane rolls (aligned: Wp is a multiple of 8).
        taps = []
        for j in range(4):                                    # rows row0..row0+3
            xr = x_ref[0, row0 + j, :, :]                     # (Wp, 1) f32
            xb = jnp.broadcast_to(xr, (Wp, Cout)).astype(jnp.float32)
            t = [xb[:W, :]]
            for kw in (1, 2):
                t.append(pltpu.roll(xb, Wp - kw, 0)[:W, :])   # tap[w] = x[w+kw]
            taps.append(t)

        acc0 = jnp.zeros((W, Cout), jnp.float32)              # conv row 2r
        acc1 = jnp.zeros((W, Cout), jnp.float32)              # conv row 2r+1
        for kh in range(3):
            for kw in range(3):
                wk = wks[kh * 3 + kw]
                acc0 = acc0 + taps[kh][kw] * wk
                acc1 = acc1 + taps[kh + 1][kw] * wk

        r0 = jnp.maximum(acc0 + bias, 0.0)
        r1 = jnp.maximum(acc1 + bias, 0.0)
        # 2x2 max-pool: row pair in registers, width via stride-2 loads; the
        # 2-row zero margins of m_ref emit the width zero-padding for conv2.
        m_ref[pl.ds(2, W), :] = jnp.maximum(r0, r1)
        row_out = jnp.maximum(m_ref[pl.ds(0, Wo + 2, stride=2), :],
                              m_ref[pl.ds(1, Wo + 2, stride=2), :])  # (Wo+2, C1)
        o_ref[0, 1 + r, :, :] = row_out.astype(o_ref.dtype)
        return carry

    lax.fori_loop(0, Ho, row_body, 0)


def conv1_relu_pool(x_nhwc, w, b, *, out_dtype=jnp.bfloat16):
    B, H, W, Cin = x_nhwc.shape
    assert Cin == 1 and H % 2 == 0 and W % 2 == 0
    Ho, Wo = H // 2, W // 2
    Cout = w.shape[-1]
    Wp = W + 2 + (-(W + 2)) % 8                 # sublane-aligned padded width
    x_pad = jnp.pad(x_nhwc, ((0, 0), (1, 1), (1, Wp - W - 1), (0, 0)))
    return pl.pallas_call(
        _conv1_kernel,
        out_shape=jax.ShapeDtypeStruct((B, Ho + 2, Wo + 2, Cout), out_dtype),
        grid=(B,),
        in_specs=[
            pl.BlockSpec((1, H + 2, Wp, 1), lambda b_: (b_, 0, 0, 0)),
            pl.BlockSpec((9, Cout), lambda b_: (0, 0)),
            pl.BlockSpec((1, Cout), lambda b_: (0, 0)),
        ],
        out_specs=pl.BlockSpec((1, Ho + 2, Wo + 2, Cout), lambda b_: (b_, 0, 0, 0)),
        scratch_shapes=[pltpu.VMEM((W + 4, Cout), jnp.float32)],
        compiler_params=pltpu.CompilerParams(dimension_semantics=("parallel",)),
    )(x_pad, w, b)


# --------------------- conv2: 3x3 (MXU, K=32) + ReLU + maxpool -------------- #

def _conv2_kernel(x_ref, w_ref, b_ref, o_ref, m_ref):
    """Whole image per grid step; 9 accumulating K=Cin matmuls per conv row.

    x_ref: (1, H+2, W+2, C1)   bf16 pre-padded activation (border already zero)
    w_ref: (9, C1, C2)         bf16 taps, row = kh*3 + kw  (K = 32, unpadded)
    b_ref: (1, C2)             f32
    o_ref: (1, Ho, Wo, C2)     bf16 pooled output (feeds the FC)
    m_ref: (W, C2)             f32 scratch for width pooling
    """
    _, Ho, Wo, Cout = o_ref.shape
    W = 2 * Wo

    wks = [w_ref[t] for t in range(9)]                        # (C1, C2) bf16
    bias = jnp.broadcast_to(b_ref[...], (W, Cout))

    def row_body(r, carry):
        row0 = 2 * r
        # Ref ds-loads for the taps (proven path); conv2 is MXU-push bound.
        taps = [[x_ref[0, row0 + j, pl.ds(kw, W), :] for kw in range(3)]
                for j in range(4)]                            # (W, C1) bf16
        acc0 = jnp.zeros((W, Cout), jnp.float32)
        acc1 = jnp.zeros((W, Cout), jnp.float32)
        for kh in range(3):
            for kw in range(3):
                wk = wks[kh * 3 + kw]
                acc0 = acc0 + jnp.dot(taps[kh][kw], wk,
                                      preferred_element_type=jnp.float32)
                acc1 = acc1 + jnp.dot(taps[kh + 1][kw], wk,
                                      preferred_element_type=jnp.float32)
        r0 = jnp.maximum(acc0 + bias, 0.0)
        r1 = jnp.maximum(acc1 + bias, 0.0)
        m_ref[...] = jnp.maximum(r0, r1)
        pooled = jnp.maximum(m_ref[pl.ds(0, Wo, stride=2), :],
                             m_ref[pl.ds(1, Wo, stride=2), :])      # (Wo, C2)
        o_ref[0, r, :, :] = pooled.astype(o_ref.dtype)
        return carry

    lax.fori_loop(0, Ho, row_body, 0)


def conv2_relu_pool(x_pad, w, b, *, out_dtype=jnp.bfloat16):
    B, Hp2, Wp2, Cin = x_pad.shape
    H, W = Hp2 - 2, Wp2 - 2
    Ho, Wo = H // 2, W // 2
    Cout = w.shape[-1]
    return pl.pallas_call(
        _conv2_kernel,
        out_shape=jax.ShapeDtypeStruct((B, Ho, Wo, Cout), out_dtype),
        grid=(B,),
        in_specs=[
            pl.BlockSpec((1, Hp2, Wp2, Cin), lambda b_: (b_, 0, 0, 0)),
            pl.BlockSpec((9, Cin, Cout), lambda b_: (0, 0, 0)),
            pl.BlockSpec((1, Cout), lambda b_: (0, 0)),
        ],
        out_specs=pl.BlockSpec((1, Ho, Wo, Cout), lambda b_: (b_, 0, 0, 0)),
        scratch_shapes=[pltpu.VMEM((W, Cout), jnp.float32)],
        compiler_params=pltpu.CompilerParams(dimension_semantics=("parallel",)),
    )(x_pad, w, b)


# ----------------------------- FC GEMM (+ bias) ----------------------------- #

def _fc_kernel(x_ref, w_ref, b_ref, o_ref):
    o_ref[...] = (jnp.dot(x_ref[...], w_ref[...],
                          preferred_element_type=jnp.float32)
                  + b_ref[...]).astype(o_ref.dtype)


def fc_gemm(x, w, b):
    """Single-step GEMM: with tiny M the FC is pure weight streaming, so one
    grid step over the halved K (3136) beats a multi-step K pipeline's fixed
    per-step overhead. N is lane-dense (10 -> 128, sliced outside)."""
    # TODO(synk): on v7x, split K across the two TensorCores if the FC ever
    # shows up in the profile (two partial GEMMs summed in XLA).
    M, K = x.shape
    K2, N = w.shape
    assert K == K2 and N % 128 == 0
    return pl.pallas_call(
        _fc_kernel,
        out_shape=jax.ShapeDtypeStruct((M, N), jnp.float32),
        grid=(1,),
        in_specs=[
            pl.BlockSpec((M, K), lambda k: (0, 0)),
            pl.BlockSpec((K, N), lambda k: (0, 0)),
            pl.BlockSpec((1, N), lambda k: (0, 0)),
        ],
        out_specs=pl.BlockSpec((M, N), lambda k: (0, 0)),
        compiler_params=pltpu.CompilerParams(dimension_semantics=("arbitrary",)),
    )(x, w, b)


# ------------------------------- CNN forward -------------------------------- #

def cnn_forward(x_nchw, prep):
    B = x_nchw.shape[0]
    x = jnp.transpose(x_nchw, (0, 2, 3, 1))             # NCHW -> NHWC (Cin=1)
    h = conv1_relu_pool(x, prep["w1"], prep["b1"])      # (B,16,16,32) bf16, pre-padded
    h = conv2_relu_pool(h, prep["w2"], prep["b2"])      # (B, 7, 7,64) bf16
    feats = h.reshape(B, 7 * 7 * C2)                    # NHWC flatten (perm folded in wfc)
    logits = fc_gemm(feats, prep["wfc"], prep["bfc"])   # (B, 128) f32, lane-dense
    return logits[:, :10]


# ------------------- parameters (PyTorch-equivalent layout) ----------------- #

def init_params(key):
    k1, k2, k3 = jax.random.split(key, 3)

    def conv_init(k, cin, cout):
        fan_in = 3 * 3 * cin
        bound = (1.0 / fan_in) ** 0.5
        return jax.random.uniform(k, (3, 3, cin, cout), jnp.float32, -bound, bound)

    fan_in, fan_out = 7 * 7 * 64, 10
    limit = (6.0 / (fan_in + fan_out)) ** 0.5           # xavier_uniform_
    return dict(
        w1=conv_init(k1, 1, C1),
        b1=jnp.zeros((C1,), jnp.float32),
        w2=conv_init(k2, C1, C2),
        b2=jnp.zeros((C2,), jnp.float32),
        # wfc rows in PyTorch NCHW-flatten order: row = c*49 + h*7 + w
        wfc=jax.random.uniform(k3, (fan_in, fan_out), jnp.float32, -limit, limit),
        bfc=jnp.zeros((fan_out,), jnp.float32),
    )


def prepare_params(p):
    """One-time packing: flatten conv taps to (9, ...) for kh*3+kw indexing,
    cast MXU operands (conv2, FC) to bf16 with the *real* K (no zero channel
    padding), fold the NCHW-flatten permutation into the FC weight, and
    lane-pad only the 10 FC output columns."""
    assert p["w1"].shape == (3, 3, 1, C1) and p["w2"].shape == (3, 3, C1, C2)
    assert p["wfc"].shape == (7 * 7 * C2, 10) and p["bfc"].shape == (10,)
    w1 = p["w1"].reshape(9, C1).astype(jnp.float32)          # f32 VPU stencil (v5e-safe)
    b1 = p["b1"].reshape(1, C1).astype(jnp.float32)
    w2 = p["w2"].reshape(9, C1, C2).astype(jnp.bfloat16)     # K = 32, unpadded
    b2 = p["b2"].reshape(1, C2).astype(jnp.float32)
    # FC rows: NCHW-flatten (c*49 + h*7 + w) -> NHWC-flatten (h*7*C2 + w*C2 + c)
    wfc = p["wfc"].reshape(C2, 7, 7, 10)                     # (c, h, w, n)
    wfc = jnp.transpose(wfc, (1, 2, 0, 3))                   # (h, w, c, n)
    wfc = wfc.reshape(7 * 7 * C2, 10)
    wfc = jnp.pad(wfc, ((0, 0), (0, FC_N_PAD - 10))).astype(jnp.bfloat16)
    bfc = jnp.pad(p["bfc"], (0, FC_N_PAD - 10)).reshape(1, FC_N_PAD).astype(jnp.float32)
    return dict(w1=w1, b1=b1, w2=w2, b2=b2, wfc=wfc, bfc=bfc)


if __name__ == "__main__":
    key = jax.random.PRNGKey(0)
    kx, kp = jax.random.split(key)
    # fc expects 7*7*64 features => 28x28 spatial, Cin=1 (MNIST-like).
    x = jax.random.normal(kx, (2, 1, 28, 28), jnp.float32)
    params = init_params(kp)
    prep = prepare_params(params)            # one-time weight packing (outside jit)

    fwd = jax.jit(cnn_forward)
    out = jax.block_until_ready(fwd(x, prep))
    assert out.shape == (2, 10) and out.dtype == jnp.float32
    assert bool(jnp.all(jnp.isfinite(out)))
    print("KERNEL_OK")
</pallas_src>

<mosaic_0001>
module attributes {stable_mosaic.version = 11 : i64} {
  func.func @_conv1_kernel(%arg0: i32, %arg1: memref<1x30x32x1xf32, #tpu.memory_space<vmem>>, %arg2: memref<9x32xf32, #tpu.memory_space<vmem>>, %arg3: memref<1x32xf32, #tpu.memory_space<vmem>>, %arg4: memref<1x16x16x32xbf16, #tpu.memory_space<vmem>>, %arg5: memref<32x32xf32, #tpu.memory_space<vmem>>) attributes {dimension_semantics = [#tpu.dimension_semantics<parallel>], iteration_bounds = array<i64: 2>, scalar_prefetch = 0 : i64, scratch_operands = 1 : i64, tpu.core_type = #tpu.core_type<tc>, window_params = [{transform_indices = @transform_0, window_bounds = array<i64: 1, 30, 32, 1>}, {pipeline_mode = #tpu.pipeline_mode<synchronous>, transform_indices = @transform_1, window_bounds = array<i64: 9, 32>}, {pipeline_mode = #tpu.pipeline_mode<synchronous>, transform_indices = @transform_2, window_bounds = array<i64: 1, 32>}, {transform_indices = @transform_3, window_bounds = array<i64: 1, 16, 16, 32>}]} {
    %c0 = arith.constant 0 : index
    %c0_0 = arith.constant 0 : index
    %0 = vector.load %arg2[%c0, %c0_0] : memref<9x32xf32, #tpu.memory_space<vmem>>, vector<1x32xf32>
    %1 = vector.shape_cast %0 : vector<1x32xf32> to vector<1x32xf32>
    %2 = vector.broadcast %1 : vector<1x32xf32> to vector<28x32xf32>
    %c1 = arith.constant 1 : index
    %c0_1 = arith.constant 0 : index
    %3 = vector.load %arg2[%c1, %c0_1] : memref<9x32xf32, #tpu.memory_space<vmem>>, vector<1x32xf32>
    %4 = vector.shape_cast %3 : vector<1x32xf32> to vector<1x32xf32>
    %5 = vector.broadcast %4 : vector<1x32xf32> to vector<28x32xf32>
    %c2 = arith.constant 2 : index
    %c0_2 = arith.constant 0 : index
    %6 = vector.load %arg2[%c2, %c0_2] : memref<9x32xf32, #tpu.memory_space<vmem>>, vector<1x32xf32>
    %7 = vector.shape_cast %6 : vector<1x32xf32> to vector<1x32xf32>
    %8 = vector.broadcast %7 : vector<1x32xf32> to vector<28x32xf32>
    %c3 = arith.constant 3 : index
    %c0_3 = arith.constant 0 : index
    %9 = vector.load %arg2[%c3, %c0_3] : memref<9x32xf32, #tpu.memory_space<vmem>>, vector<1x32xf32>
    %10 = vector.shape_cast %9 : vector<1x32xf32> to vector<1x32xf32>
    %11 = vector.broadcast %10 : vector<1x32xf32> to vector<28x32xf32>
    %c4 = arith.constant 4 : index
    %c0_4 = arith.constant 0 : index
    %12 = vector.load %arg2[%c4, %c0_4] : memref<9x32xf32, #tpu.memory_space<vmem>>, vector<1x32xf32>
    %13 = vector.shape_cast %12 : vector<1x32xf32> to vector<1x32xf32>
    %14 = vector.broadcast %13 : vector<1x32xf32> to vector<28x32xf32>
    %c5 = arith.constant 5 : index
    %c0_5 = arith.constant 0 : index
    %15 = vector.load %arg2[%c5, %c0_5] : memref<9x32xf32, #tpu.memory_space<vmem>>, vector<1x32xf32>
    %16 = vector.shape_cast %15 : vector<1x32xf32> to vector<1x32xf32>
    %17 = vector.broadcast %16 : vector<1x32xf32> to vector<28x32xf32>
    %c6 = arith.constant 6 : index
    %c0_6 = arith.constant 0 : index
    %18 = vector.load %arg2[%c6, %c0_6] : memref<9x32xf32, #tpu.memory_space<vmem>>, vector<1x32xf32>
    %19 = vector.shape_cast %18 : vector<1x32xf32> to vector<1x32xf32>
    %20 = vector.broadcast %19 : vector<1x32xf32> to vector<28x32xf32>
    %c7 = arith.constant 7 : index
    %c0_7 = arith.constant 0 : index
    %21 = vector.load %arg2[%c7, %c0_7] : memref<9x32xf32, #tpu.memory_space<vmem>>, vector<1x32xf32>
    %22 = vector.shape_cast %21 : vector<1x32xf32> to vector<1x32xf32>
    %23 = vector.broadcast %22 : vector<1x32xf32> to vector<28x32xf32>
    %c8 = arith.constant 8 : index
    %c0_8 = arith.constant 0 : index
    %24 = vector.load %arg2[%c8, %c0_8] : memref<9x32xf32, #tpu.memory_space<vmem>>, vector<1x32xf32>
    %25 = vector.shape_cast %24 : vector<1x32xf32> to vector<1x32xf32>
    %26 = vector.broadcast %25 : vector<1x32xf32> to vector<28x32xf32>
    %c0_9 = arith.constant 0 : index
    %c0_10 = arith.constant 0 : index
    %27 = vector.load %arg3[%c0_9, %c0_10] : memref<1x32xf32, #tpu.memory_space<vmem>>, vector<1x32xf32>
    %28 = vector.shape_cast %27 : vector<1x32xf32> to vector<1x32xf32>
    %29 = vector.broadcast %28 : vector<1x32xf32> to vector<28x32xf32>
    %cst = arith.constant 0.000000e+00 : bf16
    %30 = vector.broadcast %cst : bf16 to vector<16x32xbf16>
    %c0_11 = arith.constant 0 : index
    %c0_12 = arith.constant 0 : index
    %c0_13 = arith.constant 0 : index
    %c0_14 = arith.constant 0 : index
    %31 = vector.load %arg4[%c0_11, %c0_12, %c0_13, %c0_14] : memref<1x16x16x32xbf16, #tpu.memory_space<vmem>>, vector<1x1x16x32xbf16>
    %32 = vector.shape_cast %31 : vector<1x1x16x32xbf16> to vector<16x32xbf16>
    %33 = vector.shape_cast %30 : vector<16x32xbf16> to vector<1x1x16x32xbf16>
    tpu.vector_store %arg4[%c0_11, %c0_12, %c0_13, %c0_14], %33 {strides = array<i32>} : memref<1x16x16x32xbf16, #tpu.memory_space<vmem>>, vector<1x1x16x32xbf16>,
    %c0_15 = arith.constant 0 : index
    %c15 = arith.constant 15 : index
    %c0_16 = arith.constant 0 : index
    %c0_17 = arith.constant 0 : index
    %34 = vector.load %arg4[%c0_15, %c15, %c0_16, %c0_17] : memref<1x16x16x32xbf16, #tpu.memory_space<vmem>>, vector<1x1x16x32xbf16>
    %35 = vector.shape_cast %34 : vector<1x1x16x32xbf16> to vector<16x32xbf16>
    %36 = vector.shape_cast %30 : vector<16x32xbf16> to vector<1x1x16x32xbf16>
    tpu.vector_store %arg4[%c0_15, %c15, %c0_16, %c0_17], %36 {strides = array<i32>} : memref<1x16x16x32xbf16, #tpu.memory_space<vmem>>, vector<1x1x16x32xbf16>,
    %cst_18 = arith.constant 0.000000e+00 : f32
    %37 = vector.broadcast %cst_18 : f32 to vector<32x32xf32>
    %c0_19 = arith.constant 0 : index
    %c0_20 = arith.constant 0 : index
    %38 = vector.load %arg5[%c0_19, %c0_20] : memref<32x32xf32, #tpu.memory_space<vmem>>, vector<32x32xf32>
    tpu.vector_store %arg5[%c0_19, %c0_20], %37 {strides = array<i32>} : memref<32x32xf32, #tpu.memory_space<vmem>>, vector<32x32xf32>,
    %c0_i32 = arith.constant 0 : i32
    %c14_i32 = arith.constant 14 : i32
    %39 = arith.addi %c0_i32, %c14_i32 : i32
    %c1_i32 = arith.constant 1 : i32
    scf.for %arg6 = %c0_i32 to %39 step %c1_i32  : i32 {
      %c2_i32 = arith.constant 2 : i32
      %40 = arith.muli %c2_i32, %arg6 : i32
      %c0_i32_22 = arith.constant 0 : i32
      %41 = arith.addi %40, %c0_i32_22 : i32
      %c0_23 = arith.constant 0 : index
      %42 = arith.index_cast %41 : i32 to index
      %c0_24 = arith.constant 0 : index
      %c0_25 = arith.constant 0 : index
      %43 = vector.load %arg1[%c0_23, %42, %c0_24, %c0_25] : memref<1x30x32x1xf32, #tpu.memory_space<vmem>>, vector<1x1x32x1xf32>
      %44 = vector.shape_cast %43 : vector<1x1x32x1xf32> to vector<32x1xf32>
      %45 = vector.shape_cast %44 : vector<32x1xf32> to vector<32x1xf32>
      %46 = vector.broadcast %45 : vector<32x1xf32> to vector<32x32xf32>
      %47 = vector.extract_strided_slice %46 {offsets = [0, 0], sizes = [28, 32], strides = [1, 1]} : vector<32x32xf32> to vector<28x32xf32>
      %c31_i32 = arith.constant 31 : i32
      %48 = tpu.dynamic_rotate %46 by %c31_i32 dim 0 : vector<32x32xf32>, i32 -> vector<32x32xf32>
      %49 = vector.extract_strided_slice %48 {offsets = [0, 0], sizes = [28, 32], strides = [1, 1]} : vector<32x32xf32> to vector<28x32xf32>
      %c30_i32 = arith.constant 30 : i32
      %50 = tpu.dynamic_rotate %46 by %c30_i32 dim 0 : vector<32x32xf32>, i32 -> vector<32x32xf32>
      %51 = vector.extract_strided_slice %50 {offsets = [0, 0], sizes = [28, 32], strides = [1, 1]} : vector<32x32xf32> to vector<28x32xf32>
      %c1_i32_26 = arith.constant 1 : i32
      %52 = arith.addi %40, %c1_i32_26 : i32
      %c0_27 = arith.constant 0 : index
      %53 = arith.index_cast %52 : i32 to index
      %c0_28 = arith.constant 0 : index
      %c0_29 = arith.constant 0 : index
      %54 = vector.load %arg1[%c0_27, %53, %c0_28, %c0_29] : memref<1x30x32x1xf32, #tpu.memory_space<vmem>>, vector<1x1x32x1xf32>
      %55 = vector.shape_cast %54 : vector<1x1x32x1xf32> to vector<32x1xf32>
      %56 = vector.shape_cast %55 : vector<32x1xf32> to vector<32x1xf32>
      %57 = vector.broadcast %56 : vector<32x1xf32> to vector<32x32xf32>
      %58 = vector.extract_strided_slice %57 {offsets = [0, 0], sizes = [28, 32], strides = [1, 1]} : vector<32x32xf32> to vector<28x32xf32>
      %c31_i32_30 = arith.constant 31 : i32
      %59 = tpu.dynamic_rotate %57 by %c31_i32_30 dim 0 : vector<32x32xf32>, i32 -> vector<32x32xf32>
      %60 = vector.extract_strided_slice %59 {offsets = [0, 0], sizes = [28, 32], strides = [1, 1]} : vector<32x32xf32> to vector<28x32xf32>
      %c30_i32_31 = arith.constant 30 : i32
      %61 = tpu.dynamic_rotate %57 by %c30_i32_31 dim 0 : vector<32x32xf32>, i32 -> vector<32x32xf32>
      %62 = vector.extract_strided_slice %61 {offsets = [0, 0], sizes = [28, 32], strides = [1, 1]} : vector<32x32xf32> to vector<28x32xf32>
      %c2_i32_32 = arith.constant 2 : i32
      %63 = arith.addi %40, %c2_i32_32 : i32
      %c0_33 = arith.constant 0 : index
      %64 = arith.index_cast %63 : i32 to index
      %c0_34 = arith.constant 0 : index
      %c0_35 = arith.constant 0 : index
      %65 = vector.load %arg1[%c0_33, %64, %c0_34, %c0_35] : memref<1x30x32x1xf32, #tpu.memory_space<vmem>>, vector<1x1x32x1xf32>
      %66 = vector.shape_cast %65 : vector<1x1x32x1xf32> to vector<32x1xf32>
      %67 = vector.shape_cast %66 : vector<32x1xf32> to vector<32x1xf32>
      %68 = vector.broadcast %67 : vector<32x1xf32> to vector<32x32xf32>
      %69 = vector.extract_strided_slice %68 {offsets = [0, 0], sizes = [28, 32], strides = [1, 1]} : vector<32x32xf32> to vector<28x32xf32>
      %c31_i32_36 = arith.constant 31 : i32
      %70 = tpu.dynamic_rotate %68 by %c31_i32_36 dim 0 : vector<32x32xf32>, i32 -> vector<32x32xf32>
      %71 = vector.extract_strided_slice %70 {offsets = [0, 0], sizes = [28, 32], strides = [1, 1]} : vector<32x32xf32> to vector<28x32xf32>
      %c30_i32_37 = arith.constant 30 : i32
      %72 = tpu.dynamic_rotate %68 by %c30_i32_37 dim 0 : vector<32x32xf32>, i32 -> vector<32x32xf32>
      %73 = vector.extract_strided_slice %72 {offsets = [0, 0], sizes = [28, 32], strides = [1, 1]} : vector<32x32xf32> to vector<28x32xf32>
      %c3_i32 = arith.constant 3 : i32
      %74 = arith.addi %40, %c3_i32 : i32
      %c0_38 = arith.constant 0 : index
      %75 = arith.index_cast %74 : i32 to index
      %c0_39 = arith.constant 0 : index
      %c0_40 = arith.constant 0 : index
      %76 = vector.load %arg1[%c0_38, %75, %c0_39, %c0_40] : memref<1x30x32x1xf32, #tpu.memory_space<vmem>>, vector<1x1x32x1xf32>
      %77 = vector.shape_cast %76 : vector<1x1x32x1xf32> to vector<32x1xf32>
      %78 = vector.shape_cast %77 : vector<32x1xf32> to vector<32x1xf32>
      %79 = vector.broadcast %78 : vector<32x1xf32> to vector<32x32xf32>
      %80 = vector.extract_strided_slice %79 {offsets = [0, 0], sizes = [28, 32], strides = [1, 1]} : vector<32x32xf32> to vector<28x32xf32>
      %c31_i32_41 = arith.constant 31 : i32
      %81 = tpu.dynamic_rotate %79 by %c31_i32_41 dim 0 : vector<32x32xf32>, i32 -> vector<32x32xf32>
      %82 = vector.extract_strided_slice %81 {offsets = [0, 0], sizes = [28, 32], strides = [1, 1]} : vector<32x32xf32> to vector<28x32xf32>
      %c30_i32_42 = arith.constant 30 : i32
      %83 = tpu.dynamic_rotate %79 by %c30_i32_42 dim 0 : vector<32x32xf32>, i32 -> vector<32x32xf32>
      %84 = vector.extract_strided_slice %83 {offsets = [0, 0], sizes = [28, 32], strides = [1, 1]} : vector<32x32xf32> to vector<28x32xf32>
      %cst_43 = arith.constant 0.000000e+00 : f32
      %85 = vector.broadcast %cst_43 : f32 to vector<28x32xf32>
      %cst_44 = arith.constant 0.000000e+00 : f32
      %86 = vector.broadcast %cst_44 : f32 to vector<28x32xf32>
      %87 = arith.mulf %47, %2 : vector<28x32xf32>
      %88 = arith.addf %85, %87 : vector<28x32xf32>
      %89 = arith.mulf %58, %2 : vector<28x32xf32>
      %90 = arith.addf %86, %89 : vector<28x32xf32>
      %91 = arith.mulf %49, %5 : vector<28x32xf32>
      %92 = arith.addf %88, %91 : vector<28x32xf32>
      %93 = arith.mulf %60, %5 : vector<28x32xf32>
      %94 = arith.addf %90, %93 : vector<28x32xf32>
      %95 = arith.mulf %51, %8 : vector<28x32xf32>
      %96 = arith.addf %92, %95 : vector<28x32xf32>
      %97 = arith.mulf %62, %8 : vector<28x32xf32>
      %98 = arith.addf %94, %97 : vector<28x32xf32>
      %99 = arith.mulf %58, %11 : vector<28x32xf32>
      %100 = arith.addf %96, %99 : vector<28x32xf32>
      %101 = arith.mulf %69, %11 : vector<28x32xf32>
      %102 = arith.addf %98, %101 : vector<28x32xf32>
      %103 = arith.mulf %60, %14 : vector<28x32xf32>
      %104 = arith.addf %100, %103 : vector<28x32xf32>
      %105 = arith.mulf %71, %14 : vector<28x32xf32>
      %106 = arith.addf %102, %105 : vector<28x32xf32>
      %107 = arith.mulf %62, %17 : vector<28x32xf32>
      %108 = arith.addf %104, %107 : vector<28x32xf32>
      %109 = arith.mulf %73, %17 : vector<28x32xf32>
      %110 = arith.addf %106, %109 : vector<28x32xf32>
      %111 = arith.mulf %69, %20 : vector<28x32xf32>
      %112 = arith.addf %108, %111 : vector<28x32xf32>
      %113 = arith.mulf %80, %20 : vector<28x32xf32>
      %114 = arith.addf %110, %113 : vector<28x32xf32>
      %115 = arith.mulf %71, %23 : vector<28x32xf32>
      %116 = arith.addf %112, %115 : vector<28x32xf32>
      %117 = arith.mulf %82, %23 : vector<28x32xf32>
      %118 = arith.addf %114, %117 : vector<28x32xf32>
      %119 = arith.mulf %73, %26 : vector<28x32xf32>
      %120 = arith.addf %116, %119 : vector<28x32xf32>
      %121 = arith.mulf %84, %26 : vector<28x32xf32>
      %122 = arith.addf %118, %121 : vector<28x32xf32>
      %123 = arith.addf %120, %29 : vector<28x32xf32>
      %cst_45 = arith.constant 0.000000e+00 : f32
      %124 = vector.broadcast %cst_45 : f32 to vector<28x32xf32>
      %125 = arith.maximumf %123, %124 : vector<28x32xf32>
      %126 = arith.addf %122, %29 : vector<28x32xf32>
      %cst_46 = arith.constant 0.000000e+00 : f32
      %127 = vector.broadcast %cst_46 : f32 to vector<28x32xf32>
      %128 = arith.maximumf %126, %127 : vector<28x32xf32>
      %129 = arith.maximumf %125, %128 : vector<28x32xf32>
      %c2_47 = arith.constant 2 : index
      %c0_48 = arith.constant 0 : index
      %130 = vector.load %arg5[%c2_47, %c0_48] : memref<32x32xf32, #tpu.memory_space<vmem>>, vector<28x32xf32>
      tpu.vector_store %arg5[%c2_47, %c0_48], %129 {strides = array<i32>} : memref<32x32xf32, #tpu.memory_space<vmem>>, vector<28x32xf32>,
      %c0_49 = arith.constant 0 : index
      %c0_50 = arith.constant 0 : index
      %131 = tpu.strided_load %arg5[%c0_49, %c0_50] {strides = array<i32: 2, 1>} : memref<32x32xf32, #tpu.memory_space<vmem>>, vector<16x32xf32>
      %c1_51 = arith.constant 1 : index
      %c0_52 = arith.constant 0 : index
      %132 = tpu.strided_load %arg5[%c1_51, %c0_52] {strides = array<i32: 2, 1>} : memref<32x32xf32, #tpu.memory_space<vmem>>, vector<16x32xf32>
      %133 = arith.maximumf %131, %132 : vector<16x32xf32>
      %134 = arith.truncf %133 : vector<16x32xf32> to vector<16x32xbf16>
      %c1_i32_53 = arith.constant 1 : i32
      %135 = arith.addi %c1_i32_53, %arg6 : i32
      %c0_54 = arith.constant 0 : index
      %136 = arith.index_cast %135 : i32 to index
      %c0_55 = arith.constant 0 : index
      %c0_56 = arith.constant 0 : index
      %137 = vector.load %arg4[%c0_54, %136, %c0_55, %c0_56] : memref<1x16x16x32xbf16, #tpu.memory_space<vmem>>, vector<1x1x16x32xbf16>
      %138 = vector.shape_cast %137 : vector<1x1x16x32xbf16> to vector<16x32xbf16>
      %139 = vector.shape_cast %134 : vector<16x32xbf16> to vector<1x1x16x32xbf16>
      tpu.vector_store %arg4[%c0_54, %136, %c0_55, %c0_56], %139 {strides = array<i32>} : memref<1x16x16x32xbf16, #tpu.memory_space<vmem>>, vector<1x1x16x32xbf16>,
    }
    %c14_i32_21 = arith.constant 14 : i32
    return
  }
  func.func @transform_0(%arg0: i32) -> (i32, i32, i32, i32) {
    %c0_i32 = arith.constant 0 : i32
    %c0_i32_0 = arith.constant 0 : i32
    %c0_i32_1 = arith.constant 0 : i32
    %c0_i32_2 = arith.constant 0 : i32
    return %arg0, %c0_i32, %c0_i32_0, %c0_i32_1 : i32, i32, i32, i32
  }
  func.func @transform_1(%arg0: i32) -> (i32, i32) {
    %c0_i32 = arith.constant 0 : i32
    %c0_i32_0 = arith.constant 0 : i32
    %c0_i32_1 = arith.constant 0 : i32
    return %c0_i32, %c0_i32_0 : i32, i32
  }
  func.func @transform_2(%arg0: i32) -> (i32, i32) {
    %c0_i32 = arith.constant 0 : i32
    %c0_i32_0 = arith.constant 0 : i32
    %c0_i32_1 = arith.constant 0 : i32
    return %c0_i32, %c0_i32_0 : i32, i32
  }
  func.func @transform_3(%arg0: i32) -> (i32, i32, i32, i32) {
    %c0_i32 = arith.constant 0 : i32
    %c0_i32_0 = arith.constant 0 : i32
    %c0_i32_1 = arith.constant 0 : i32
    %c0_i32_2 = arith.constant 0 : i32
    return %arg0, %c0_i32, %c0_i32_0, %c0_i32_1 : i32, i32, i32, i32
  }
}

module attributes {stable_mosaic.version = 11 : i64} {
  func.func @_conv2_kernel(%arg0: i32, %arg1: memref<1x16x16x32xbf16, #tpu.memory_space<vmem>>, %arg2: memref<9x32x64xbf16, #tpu.memory_space<vmem>>, %arg3: memref<1x64xf32, #tpu.memory_space<vmem>>, %arg4: memref<1x7x7x64xbf16, #tpu.memory_space<vmem>>, %arg5: memref<14x64xf32, #tpu.memory_space<vmem>>) attributes {dimension_semantics = [#tpu.dimension_semantics<parallel>], iteration_bounds = array<i64: 2>, scalar_prefetch = 0 : i64, scratch_operands = 1 : i64, tpu.core_type = #tpu.core_type<tc>, window_params = [{transform_indices = @transform_0, window_bounds = array<i64: 1, 16, 16, 32>}, {pipeline_mode = #tpu.pipeline_mode<synchronous>, transform_indices = @transform_1, window_bounds = array<i64: 9, 32, 64>}, {pipeline_mode = #tpu.pipeline_mode<synchronous>, transform_indices = @transform_2, window_bounds = array<i64: 1, 64>}, {transform_indices = @transform_3, window_bounds = array<i64: 1, 7, 7, 64>}]} {
    %c0 = arith.constant 0 : index
    %c0_0 = arith.constant 0 : index
    %c0_1 = arith.constant 0 : index
    %0 = vector.load %arg2[%c0, %c0_0, %c0_1] : memref<9x32x64xbf16, #tpu.memory_space<vmem>>, vector<1x32x64xbf16>
    %1 = vector.shape_cast %0 : vector<1x32x64xbf16> to vector<32x64xbf16>
    %c1 = arith.constant 1 : index
    %c0_2 = arith.constant 0 : index
    %c0_3 = arith.constant 0 : index
    %2 = vector.load %arg2[%c1, %c0_2, %c0_3] : memref<9x32x64xbf16, #tpu.memory_space<vmem>>, vector<1x32x64xbf16>
    %3 = vector.shape_cast %2 : vector<1x32x64xbf16> to vector<32x64xbf16>
    %c2 = arith.constant 2 : index
    %c0_4 = arith.constant 0 : index
    %c0_5 = arith.constant 0 : index
    %4 = vector.load %arg2[%c2, %c0_4, %c0_5] : memref<9x32x64xbf16, #tpu.memory_space<vmem>>, vector<1x32x64xbf16>
    %5 = vector.shape_cast %4 : vector<1x32x64xbf16> to vector<32x64xbf16>
    %c3 = arith.constant 3 : index
    %c0_6 = arith.constant 0 : index
    %c0_7 = arith.constant 0 : index
    %6 = vector.load %arg2[%c3, %c0_6, %c0_7] : memref<9x32x64xbf16, #tpu.memory_space<vmem>>, vector<1x32x64xbf16>
    %7 = vector.shape_cast %6 : vector<1x32x64xbf16> to vector<32x64xbf16>
    %c4 = arith.constant 4 : index
    %c0_8 = arith.constant 0 : index
    %c0_9 = arith.constant 0 : index
    %8 = vector.load %arg2[%c4, %c0_8, %c0_9] : memref<9x32x64xbf16, #tpu.memory_space<vmem>>, vector<1x32x64xbf16>
    %9 = vector.shape_cast %8 : vector<1x32x64xbf16> to vector<32x64xbf16>
    %c5 = arith.constant 5 : index
    %c0_10 = arith.constant 0 : index
    %c0_11 = arith.constant 0 : index
    %10 = vector.load %arg2[%c5, %c0_10, %c0_11] : memref<9x32x64xbf16, #tpu.memory_space<vmem>>, vector<1x32x64xbf16>
    %11 = vector.shape_cast %10 : vector<1x32x64xbf16> to vector<32x64xbf16>
    %c6 = arith.constant 6 : index
    %c0_12 = arith.constant 0 : index
    %c0_13 = arith.constant 0 : index
    %12 = vector.load %arg2[%c6, %c0_12, %c0_13] : memref<9x32x64xbf16, #tpu.memory_space<vmem>>, vector<1x32x64xbf16>
    %13 = vector.shape_cast %12 : vector<1x32x64xbf16> to vector<32x64xbf16>
    %c7 = arith.constant 7 : index
    %c0_14 = arith.constant 0 : index
    %c0_15 = arith.constant 0 : index
    %14 = vector.load %arg2[%c7, %c0_14, %c0_15] : memref<9x32x64xbf16, #tpu.memory_space<vmem>>, vector<1x32x64xbf16>
    %15 = vector.shape_cast %14 : vector<1x32x64xbf16> to vector<32x64xbf16>
    %c8 = arith.constant 8 : index
    %c0_16 = arith.constant 0 : index
    %c0_17 = arith.constant 0 : index
    %16 = vector.load %arg2[%c8, %c0_16, %c0_17] : memref<9x32x64xbf16, #tpu.memory_space<vmem>>, vector<1x32x64xbf16>
    %17 = vector.shape_cast %16 : vector<1x32x64xbf16> to vector<32x64xbf16>
    %c0_18 = arith.constant 0 : index
    %c0_19 = arith.constant 0 : index
    %18 = vector.load %arg3[%c0_18, %c0_19] : memref<1x64xf32, #tpu.memory_space<vmem>>, vector<1x64xf32>
    %19 = vector.shape_cast %18 : vector<1x64xf32> to vector<1x64xf32>
    %20 = vector.broadcast %19 : vector<1x64xf32> to vector<14x64xf32>
    %c0_i32 = arith.constant 0 : i32
    %c7_i32 = arith.constant 7 : i32
    %21 = arith.addi %c0_i32, %c7_i32 : i32
    %c1_i32 = arith.constant 1 : i32
    scf.for %arg6 = %c0_i32 to %21 step %c1_i32  : i32 {
      %c2_i32 = arith.constant 2 : i32
      %22 = arith.muli %c2_i32, %arg6 : i32
      %c0_i32_21 = arith.constant 0 : i32
      %23 = arith.addi %22, %c0_i32_21 : i32
      %c0_22 = arith.constant 0 : index
      %24 = arith.index_cast %23 : i32 to index
      %c0_23 = arith.constant 0 : index
      %c0_24 = arith.constant 0 : index
      %25 = vector.load %arg1[%c0_22, %24, %c0_23, %c0_24] : memref<1x16x16x32xbf16, #tpu.memory_space<vmem>>, vector<1x1x14x32xbf16>
      %26 = vector.shape_cast %25 : vector<1x1x14x32xbf16> to vector<14x32xbf16>
      %c0_i32_25 = arith.constant 0 : i32
      %27 = arith.addi %22, %c0_i32_25 : i32
      %c0_26 = arith.constant 0 : index
      %28 = arith.index_cast %27 : i32 to index
      %c1_27 = arith.constant 1 : index
      %c0_28 = arith.constant 0 : index
      %29 = vector.load %arg1[%c0_26, %28, %c1_27, %c0_28] : memref<1x16x16x32xbf16, #tpu.memory_space<vmem>>, vector<1x1x14x32xbf16>
      %30 = vector.shape_cast %29 : vector<1x1x14x32xbf16> to vector<14x32xbf16>
      %c0_i32_29 = arith.constant 0 : i32
      %31 = arith.addi %22, %c0_i32_29 : i32
      %c0_30 = arith.constant 0 : index
      %32 = arith.index_cast %31 : i32 to index
      %c2_31 = arith.constant 2 : index
      %c0_32 = arith.constant 0 : index
      %33 = vector.load %arg1[%c0_30, %32, %c2_31, %c0_32] : memref<1x16x16x32xbf16, #tpu.memory_space<vmem>>, vector<1x1x14x32xbf16>
      %34 = vector.shape_cast %33 : vector<1x1x14x32xbf16> to vector<14x32xbf16>
      %c1_i32_33 = arith.constant 1 : i32
      %35 = arith.addi %22, %c1_i32_33 : i32
      %c0_34 = arith.constant 0 : index
      %36 = arith.index_cast %35 : i32 to index
      %c0_35 = arith.constant 0 : index
      %c0_36 = arith.constant 0 : index
      %37 = vector.load %arg1[%c0_34, %36, %c0_35, %c0_36] : memref<1x16x16x32xbf16, #tpu.memory_space<vmem>>, vector<1x1x14x32xbf16>
      %38 = vector.shape_cast %37 : vector<1x1x14x32xbf16> to vector<14x32xbf16>
      %c1_i32_37 = arith.constant 1 : i32
      %39 = arith.addi %22, %c1_i32_37 : i32
      %c0_38 = arith.constant 0 : index
      %40 = arith.index_cast %39 : i32 to index
      %c1_39 = arith.constant 1 : index
      %c0_40 = arith.constant 0 : index
      %41 = vector.load %arg1[%c0_38, %40, %c1_39, %c0_40] : memref<1x16x16x32xbf16, #tpu.memory_space<vmem>>, vector<1x1x14x32xbf16>
      %42 = vector.shape_cast %41 : vector<1x1x14x32xbf16> to vector<14x32xbf16>
      %c1_i32_41 = arith.constant 1 : i32
      %43 = arith.addi %22, %c1_i32_41 : i32
      %c0_42 = arith.constant 0 : index
      %44 = arith.index_cast %43 : i32 to index
      %c2_43 = arith.constant 2 : index
      %c0_44 = arith.constant 0 : index
      %45 = vector.load %arg1[%c0_42, %44, %c2_43, %c0_44] : memref<1x16x16x32xbf16, #tpu.memory_space<vmem>>, vector<1x1x14x32xbf16>
      %46 = vector.shape_cast %45 : vector<1x1x14x32xbf16> to vector<14x32xbf16>
      %c2_i32_45 = arith.constant 2 : i32
      %47 = arith.addi %22, %c2_i32_45 : i32
      %c0_46 = arith.constant 0 : index
      %48 = arith.index_cast %47 : i32 to index
      %c0_47 = arith.constant 0 : index
      %c0_48 = arith.constant 0 : index
      %49 = vector.load %arg1[%c0_46, %48, %c0_47, %c0_48] : memref<1x16x16x32xbf16, #tpu.memory_space<vmem>>, vector<1x1x14x32xbf16>
      %50 = vector.shape_cast %49 : vector<1x1x14x32xbf16> to vector<14x32xbf16>
      %c2_i32_49 = arith.constant 2 : i32
      %51 = arith.addi %22, %c2_i32_49 : i32
      %c0_50 = arith.constant 0 : index
      %52 = arith.index_cast %51 : i32 to index
      %c1_51 = arith.constant 1 : index
      %c0_52 = arith.constant 0 : index
      %53 = vector.load %arg1[%c0_50, %52, %c1_51, %c0_52] : memref<1x16x16x32xbf16, #tpu.memory_space<vmem>>, vector<1x1x14x32xbf16>
      %54 = vector.shape_cast %53 : vector<1x1x14x32xbf16> to vector<14x32xbf16>
      %c2_i32_53 = arith.constant 2 : i32
      %55 = arith.addi %22, %c2_i32_53 : i32
      %c0_54 = arith.constant 0 : index
      %56 = arith.index_cast %55 : i32 to index
      %c2_55 = arith.constant 2 : index
      %c0_56 = arith.constant 0 : index
      %57 = vector.load %arg1[%c0_54, %56, %c2_55, %c0_56] : memref<1x16x16x32xbf16, #tpu.memory_space<vmem>>, vector<1x1x14x32xbf16>
      %58 = vector.shape_cast %57 : vector<1x1x14x32xbf16> to vector<14x32xbf16>
      %c3_i32 = arith.constant 3 : i32
      %59 = arith.addi %22, %c3_i32 : i32
      %c0_57 = arith.constant 0 : index
      %60 = arith.index_cast %59 : i32 to index
      %c0_58 = arith.constant 0 : index
      %c0_59 = arith.constant 0 : index
      %61 = vector.load %arg1[%c0_57, %60, %c0_58, %c0_59] : memref<1x16x16x32xbf16, #tpu.memory_space<vmem>>, vector<1x1x14x32xbf16>
      %62 = vector.shape_cast %61 : vector<1x1x14x32xbf16> to vector<14x32xbf16>
      %c3_i32_60 = arith.constant 3 : i32
      %63 = arith.addi %22, %c3_i32_60 : i32
      %c0_61 = arith.constant 0 : index
      %64 = arith.index_cast %63 : i32 to index
      %c1_62 = arith.constant 1 : index
      %c0_63 = arith.constant 0 : index
      %65 = vector.load %arg1[%c0_61, %64, %c1_62, %c0_63] : memref<1x16x16x32xbf16, #tpu.memory_space<vmem>>, vector<1x1x14x32xbf16>
      %66 = vector.shape_cast %65 : vector<1x1x14x32xbf16> to vector<14x32xbf16>
      %c3_i32_64 = arith.constant 3 : i32
      %67 = arith.addi %22, %c3_i32_64 : i32
      %c0_65 = arith.constant 0 : index
      %68 = arith.index_cast %67 : i32 to index
      %c2_66 = arith.constant 2 : index
      %c0_67 = arith.constant 0 : index
      %69 = vector.load %arg1[%c0_65, %68, %c2_66, %c0_67] : memref<1x16x16x32xbf16, #tpu.memory_space<vmem>>, vector<1x1x14x32xbf16>
      %70 = vector.shape_cast %69 : vector<1x1x14x32xbf16> to vector<14x32xbf16>
      %cst = arith.constant 0.000000e+00 : f32
      %71 = vector.broadcast %cst : f32 to vector<14x64xf32>
      %cst_68 = arith.constant 0.000000e+00 : f32
      %72 = vector.broadcast %cst_68 : f32 to vector<14x64xf32>
      %cst_69 = arith.constant dense<0.000000e+00> : vector<14x64xf32>
      %73 = tpu.matmul %26, %1, %cst_69 {dimension_numbers = #tpu.dot_dimension_numbers<[1], [0], [0], [1], [0, 0, 1, 1], [], []>} : vector<14x32xbf16>, vector<32x64xbf16>, vector<14x64xf32> -> vector<14x64xf32>
      %74 = arith.addf %71, %73 : vector<14x64xf32>
      %cst_70 = arith.constant dense<0.000000e+00> : vector<14x64xf32>
      %75 = tpu.matmul %38, %1, %cst_70 {dimension_numbers = #tpu.dot_dimension_numbers<[1], [0], [0], [1], [0, 0, 1, 1], [], []>} : vector<14x32xbf16>, vector<32x64xbf16>, vector<14x64xf32> -> vector<14x64xf32>
      %76 = arith.addf %72, %75 : vector<14x64xf32>
      %cst_71 = arith.constant dense<0.000000e+00> : vector<14x64xf32>
      %77 = tpu.matmul %30, %3, %cst_71 {dimension_numbers = #tpu.dot_dimension_numbers<[1], [0], [0], [1], [0, 0, 1, 1], [], []>} : vector<14x32xbf16>, vector<32x64xbf16>, vector<14x64xf32> -> vector<14x64xf32>
      %78 = arith.addf %74, %77 : vector<14x64xf32>
      %cst_72 = arith.constant dense<0.000000e+00> : vector<14x64xf32>
      %79 = tpu.matmul %42, %3, %cst_72 {dimension_numbers = #tpu.dot_dimension_numbers<[1], [0], [0], [1], [0, 0, 1, 1], [], []>} : vector<14x32xbf16>, vector<32x64xbf16>, vector<14x64xf32> -> vector<14x64xf32>
      %80 = arith.addf %76, %79 : vector<14x64xf32>
      %cst_73 = arith.constant dense<0.000000e+00> : vector<14x64xf32>
      %81 = tpu.matmul %34, %5, %cst_73 {dimension_numbers = #tpu.dot_dimension_numbers<[1], [0], [0], [1], [0, 0, 1, 1], [], []>} : vector<14x32xbf16>, vector<32x64xbf16>, vector<14x64xf32> -> vector<14x64xf32>
      %82 = arith.addf %78, %81 : vector<14x64xf32>
      %cst_74 = arith.constant dense<0.000000e+00> : vector<14x64xf32>
      %83 = tpu.matmul %46, %5, %cst_74 {dimension_numbers = #tpu.dot_dimension_numbers<[1], [0], [0], [1], [0, 0, 1, 1], [], []>} : vector<14x32xbf16>, vector<32x64xbf16>, vector<14x64xf32> -> vector<14x64xf32>
      %84 = arith.addf %80, %83 : vector<14x64xf32>
      %cst_75 = arith.constant dense<0.000000e+00> : vector<14x64xf32>
      %85 = tpu.matmul %38, %7, %cst_75 {dimension_numbers = #tpu.dot_dimension_numbers<[1], [0], [0], [1], [0, 0, 1, 1], [], []>} : vector<14x32xbf16>, vector<32x64xbf16>, vector<14x64xf32> -> vector<14x64xf32>
      %86 = arith.addf %82, %85 : vector<14x64xf32>
      %cst_76 = arith.constant dense<0.000000e+00> : vector<14x64xf32>
      %87 = tpu.matmul %50, %7, %cst_76 {dimension_numbers = #tpu.dot_dimension_numbers<[1], [0], [0], [1], [0, 0, 1, 1], [], []>} : vector<14x32xbf16>, vector<32x64xbf16>, vector<14x64xf32> -> vector<14x64xf32>
      %88 = arith.addf %84, %87 : vector<14x64xf32>
      %cst_77 = arith.constant dense<0.000000e+00> : vector<14x64xf32>
      %89 = tpu.matmul %42, %9, %cst_77 {dimension_numbers = #tpu.dot_dimension_numbers<[1], [0], [0], [1], [0, 0, 1, 1], [], []>} : vector<14x32xbf16>, vector<32x64xbf16>, vector<14x64xf32> -> vector<14x64xf32>
      %90 = arith.addf %86, %89 : vector<14x64xf32>
      %cst_78 = arith.constant dense<0.000000e+00> : vector<14x64xf32>
      %91 = tpu.matmul %54, %9, %cst_78 {dimension_numbers = #tpu.dot_dimension_numbers<[1], [0], [0], [1], [0, 0, 1, 1], [], []>} : vector<14x32xbf16>, vector<32x64xbf16>, vector<14x64xf32> -> vector<14x64xf32>
      %92 = arith.addf %88, %91 : vector<14x64xf32>
      %cst_79 = arith.constant dense<0.000000e+00> : vector<14x64xf32>
      %93 = tpu.matmul %46, %11, %cst_79 {dimension_numbers = #tpu.dot_dimension_numbers<[1], [0], [0], [1], [0, 0, 1, 1], [], []>} : vector<14x32xbf16>, vector<32x64xbf16>, vector<14x64xf32> -> vector<14x64xf32>
      %94 = arith.addf %90, %93 : vector<14x64xf32>
      %cst_80 = arith.constant dense<0.000000e+00> : vector<14x64xf32>
      %95 = tpu.matmul %58, %11, %cst_80 {dimension_numbers = #tpu.dot_dimension_numbers<[1], [0], [0], [1], [0, 0, 1, 1], [], []>} : vector<14x32xbf16>, vector<32x64xbf16>, vector<14x64xf32> -> vector<14x64xf32>
      %96 = arith.addf %92, %95 : vector<14x64xf32>
      %cst_81 = arith.constant dense<0.000000e+00> : vector<14x64xf32>
      %97 = tpu.matmul %50, %13, %cst_81 {dimension_numbers = #tpu.dot_dimension_numbers<[1], [0], [0], [1], [0, 0, 1, 1], [], []>} : vector<14x32xbf16>, vector<32x64xbf16>, vector<14x64xf32> -> vector<14x64xf32>
      %98 = arith.addf %94, %97 : vector<14x64xf32>
      %cst_82 = arith.constant dense<0.000000e+00> : vector<14x64xf32>
      %99 = tpu.matmul %62, %13, %cst_82 {dimension_numbers = #tpu.dot_dimension_numbers<[1], [0], [0], [1], [0, 0, 1, 1], [], []>} : vector<14x32xbf16>, vector<32x64xbf16>, vector<14x64xf32> -> vector<14x64xf32>
      %100 = arith.addf %96, %99 : vector<14x64xf32>
      %cst_83 = arith.constant dense<0.000000e+00> : vector<14x64xf32>
      %101 = tpu.matmul %54, %15, %cst_83 {dimension_numbers = #tpu.dot_dimension_numbers<[1], [0], [0], [1], [0, 0, 1, 1], [], []>} : vector<14x32xbf16>, vector<32x64xbf16>, vector<14x64xf32> -> vector<14x64xf32>
      %102 = arith.addf %98, %101 : vector<14x64xf32>
      %cst_84 = arith.constant dense<0.000000e+00> : vector<14x64xf32>
      %103 = tpu.matmul %66, %15, %cst_84 {dimension_numbers = #tpu.dot_dimension_numbers<[1], [0], [0], [1], [0, 0, 1, 1], [], []>} : vector<14x32xbf16>, vector<32x64xbf16>, vector<14x64xf32> -> vector<14x64xf32>
      %104 = arith.addf %100, %103 : vector<14x64xf32>
      %cst_85 = arith.constant dense<0.000000e+00> : vector<14x64xf32>
      %105 = tpu.matmul %58, %17, %cst_85 {dimension_numbers = #tpu.dot_dimension_numbers<[1], [0], [0], [1], [0, 0, 1, 1], [], []>} : vector<14x32xbf16>, vector<32x64xbf16>, vector<14x64xf32> -> vector<14x64xf32>
      %106 = arith.addf %102, %105 : vector<14x64xf32>
      %cst_86 = arith.constant dense<0.000000e+00> : vector<14x64xf32>
      %107 = tpu.matmul %70, %17, %cst_86 {dimension_numbers = #tpu.dot_dimension_numbers<[1], [0], [0], [1], [0, 0, 1, 1], [], []>} : vector<14x32xbf16>, vector<32x64xbf16>, vector<14x64xf32> -> vector<14x64xf32>
      %108 = arith.addf %104, %107 : vector<14x64xf32>
      %109 = arith.addf %106, %20 : vector<14x64xf32>
      %cst_87 = arith.constant 0.000000e+00 : f32
      %110 = vector.broadcast %cst_87 : f32 to vector<14x64xf32>
      %111 = arith.maximumf %109, %110 : vector<14x64xf32>
      %112 = arith.addf %108, %20 : vector<14x64xf32>
      %cst_88 = arith.constant 0.000000e+00 : f32
      %113 = vector.broadcast %cst_88 : f32 to vector<14x64xf32>
      %114 = arith.maximumf %112, %113 : vector<14x64xf32>
      %115 = arith.maximumf %111, %114 : vector<14x64xf32>
      %c0_89 = arith.constant 0 : index
      %c0_90 = arith.constant 0 : index
      %116 = vector.load %arg5[%c0_89, %c0_90] : memref<14x64xf32, #tpu.memory_space<vmem>>, vector<14x64xf32>
      tpu.vector_store %arg5[%c0_89, %c0_90], %115 {strides = array<i32>} : memref<14x64xf32, #tpu.memory_space<vmem>>, vector<14x64xf32>,
      %c0_91 = arith.constant 0 : index
      %c0_92 = arith.constant 0 : index
      %117 = tpu.strided_load %arg5[%c0_91, %c0_92] {strides = array<i32: 2, 1>} : memref<14x64xf32, #tpu.memory_space<vmem>>, vector<7x64xf32>
      %c1_93 = arith.constant 1 : index
      %c0_94 = arith.constant 0 : index
      %118 = tpu.strided_load %arg5[%c1_93, %c0_94] {strides = array<i32: 2, 1>} : memref<14x64xf32, #tpu.memory_space<vmem>>, vector<7x64xf32>
      %119 = arith.maximumf %117, %118 : vector<7x64xf32>
      %120 = arith.truncf %119 : vector<7x64xf32> to vector<7x64xbf16>
      %c0_95 = arith.constant 0 : index
      %121 = arith.index_cast %arg6 : i32 to index
      %c0_96 = arith.constant 0 : index
      %c0_97 = arith.constant 0 : index
      %122 = vector.load %arg4[%c0_95, %121, %c0_96, %c0_97] : memref<1x7x7x64xbf16, #tpu.memory_space<vmem>>, vector<1x1x7x64xbf16>
      %123 = vector.shape_cast %122 : vector<1x1x7x64xbf16> to vector<7x64xbf16>
      %124 = vector.shape_cast %120 : vector<7x64xbf16> to vector<1x1x7x64xbf16>
      tpu.vector_store %arg4[%c0_95, %121, %c0_96, %c0_97], %124 {strides = array<i32>} : memref<1x7x7x64xbf16, #tpu.memory_space<vmem>>, vector<1x1x7x64xbf16>,
    }
    %c7_i32_20 = arith.constant 7 : i32
    return
  }
  func.func @transform_0(%arg0: i32) -> (i32, i32, i32, i32) {
    %c0_i32 = arith.constant 0 : i32
    %c0_i32_0 = arith.constant 0 : i32
    %c0_i32_1 = arith.constant 0 : i32
    %c0_i32_2 = arith.constant 0 : i32
    return %arg0, %c0_i32, %c0_i32_0, %c0_i32_1 : i32, i32, i32, i32
  }
  func.func @transform_1(%arg0: i32) -> (i32, i32, i32) {
    %c0_i32 = arith.constant 0 : i32
    %c0_i32_0 = arith.constant 0 : i32
    %c0_i32_1 = arith.constant 0 : i32
    %c0_i32_2 = arith.constant 0 : i32
    return %c0_i32, %c0_i32_0, %c0_i32_1 : i32, i32, i32
  }
  func.func @transform_2(%arg0: i32) -> (i32, i32) {
    %c0_i32 = arith.constant 0 : i32
    %c0_i32_0 = arith.constant 0 : i32
    %c0_i32_1 = arith.constant 0 : i32
    return %c0_i32, %c0_i32_0 : i32, i32
  }
  func.func @transform_3(%arg0: i32) -> (i32, i32, i32, i32) {
    %c0_i32 = arith.constant 0 : i32
    %c0_i32_0 = arith.constant 0 : i32
    %c0_i32_1 = arith.constant 0 : i32
    %c0_i32_2 = arith.constant 0 : i32
    return %arg0, %c0_i32, %c0_i32_0, %c0_i32_1 : i32, i32, i32, i32
  }
}

module attributes {stable_mosaic.version = 11 : i64} {
  func.func @_fc_kernel(%arg0: i32, %arg1: memref<2x3136xbf16, #tpu.memory_space<vmem>>, %arg2: memref<3136x128xbf16, #tpu.memory_space<vmem>>, %arg3: memref<1x128xf32, #tpu.memory_space<vmem>>, %arg4: memref<2x128xf32, #tpu.memory_space<vmem>>) attributes {dimension_semantics = [#tpu.dimension_semantics<arbitrary>], iteration_bounds = array<i64: 1>, scalar_prefetch = 0 : i64, scratch_operands = 0 : i64, tpu.core_type = #tpu.core_type<tc>, window_params = [{pipeline_mode = #tpu.pipeline_mode<synchronous>, transform_indices = @transform_0, window_bounds = array<i64: 2, 3136>}, {pipeline_mode = #tpu.pipeline_mode<synchronous>, transform_indices = @transform_1, window_bounds = array<i64: 3136, 128>}, {pipeline_mode = #tpu.pipeline_mode<synchronous>, transform_indices = @transform_2, window_bounds = array<i64: 1, 128>}, {pipeline_mode = #tpu.pipeline_mode<synchronous>, transform_indices = @transform_3, window_bounds = array<i64: 2, 128>}]} {
    %c0 = arith.constant 0 : index
    %c0_0 = arith.constant 0 : index
    %0 = vector.load %arg1[%c0, %c0_0] : memref<2x3136xbf16, #tpu.memory_space<vmem>>, vector<2x3136xbf16>
    %c0_1 = arith.constant 0 : index
    %c0_2 = arith.constant 0 : index
    %1 = vector.load %arg2[%c0_1, %c0_2] : memref<3136x128xbf16, #tpu.memory_space<vmem>>, vector<3136x128xbf16>
    %cst = arith.constant dense<0.000000e+00> : vector<2x128xf32>
    %2 = tpu.matmul %0, %1, %cst {dimension_numbers = #tpu.dot_dimension_numbers<[1], [0], [0], [1], [0, 0, 1, 1], [], []>} : vector<2x3136xbf16>, vector<3136x128xbf16>, vector<2x128xf32> -> vector<2x128xf32>
    %c0_3 = arith.constant 0 : index
    %c0_4 = arith.constant 0 : index
    %3 = vector.load %arg3[%c0_3, %c0_4] : memref<1x128xf32, #tpu.memory_space<vmem>>, vector<1x128xf32>
    %4 = vector.broadcast %3 : vector<1x128xf32> to vector<2x128xf32>
    %5 = arith.addf %2, %4 : vector<2x128xf32>
    %c0_5 = arith.constant 0 : index
    %c0_6 = arith.constant 0 : index
    %6 = vector.load %arg4[%c0_5, %c0_6] : memref<2x128xf32, #tpu.memory_space<vmem>>, vector<2x128xf32>
    tpu.vector_store %arg4[%c0_5, %c0_6], %5 {strides = array<i32>} : memref<2x128xf32, #tpu.memory_space<vmem>>, vector<2x128xf32>,
    return
  }
  func.func @transform_0(%arg0: i32) -> (i32, i32) {
    %c0_i32 = arith.constant 0 : i32
    %c0_i32_0 = arith.constant 0 : i32
    %c0_i32_1 = arith.constant 0 : i32
    return %c0_i32, %c0_i32_0 : i32, i32
  }
  func.func @transform_1(%arg0: i32) -> (i32, i32) {
    %c0_i32 = arith.constant 0 : i32
    %c0_i32_0 = arith.constant 0 : i32
    %c0_i32_1 = arith.constant 0 : i32
    return %c0_i32, %c0_i32_0 : i32, i32
  }
  func.func @transform_2(%arg0: i32) -> (i32, i32) {
    %c0_i32 = arith.constant 0 : i32
    %c0_i32_0 = arith.constant 0 : i32
    %c0_i32_1 = arith.constant 0 : i32
    return %c0_i32, %c0_i32_0 : i32, i32
  }
  func.func @transform_3(%arg0: i32) -> (i32, i32) {
    %c0_i32 = arith.constant 0 : i32
    %c0_i32_0 = arith.constant 0 : i32
    %c0_i32_1 = arith.constant 0 : i32
    return %c0_i32, %c0_i32_0 : i32, i32
  }
}

</mosaic_0001>

<bundles_post_ra>
// kernel: cnn_forward.3
= control target key start
LH: loop header
LB: loop body
LE: loop exit
PB: predicated region body
PF: predicated region fallthrough
CT: control target
= control target key end

     0   :  { %s800_s12 = smov 0   ;;  %s1091_s0 = inlined_call_operand.vmem [shape: f32[2,30,32,1], index: 0, kind: input, shape index: {}]   ;;  %s1092_s1 = inlined_call_operand.vmem [shape: f32[9,32], index: 1, kind: input, shape index: {}]   ;;  %s1093_s2 = inlined_call_operand.vmem [shape: f32[1,32], index: 2, kind: input, shape index: {}]   ;;  %s1094_s3 = inlined_call_operand.vmem [shape: bf16[2,16,16,32], index: 3, kind: output, shape index: {}]  }
   0x1 LB: > { %s685_s13 = sadd.s32 4294967295, %s771_s12   ;;  %p689_p0 = scmp.ge.s32.totalorder %s771_s12, 1  ;;  %s771_s12 = sphi %s800_s12, %s13_s12  }
   0x2   : > { %p137_p1 = scmp.lt.s32.totalorder %s771_s12, 3 }
   0x4   : > { %p138_p2 = pnand %p689_p0, %p137_p1 }
   0x5   : > { %p161_p3 = scmp.lt.s32.totalorder (!%p138_p2), %s685_s13, 1  ;;  %s880_s16 = smov (!%p138_p2), 0  }
   0x6   : > { %141 = sbr.rel (%p138_p2) target bundleno = 224 (0xe0), region = 32 }
   0xb   : > { %v811_v0 = vld [vmem:[%s1092_s1] ss:$0 sm:$0xff]  ;;  %v816_v1 = vld [vmem:[%s1092_s1 + $0x1] ss:$0 sm:$0xff]  ;;  %vm224_vm0 = vcmask 257024   ;;  %s1096_s13 = smov (!%p161_p3, %s685_s13), 1 }
   0xc   : > { %v821_v2 = vld [vmem:[%s1092_s1 + $0x2] ss:$0 sm:$0xff]  ;;  %v826_v3 = vld [vmem:[%s1092_s1 + $0x3] ss:$0 sm:$0xff]  ;;  %v831_v4 = vld [vmem:[%s1092_s1 + $0x4] ss:$0 sm:$0xff] }
   0xd   : > { %v836_v5 = vld [vmem:[%s1092_s1 + $0x5] ss:$0 sm:$0xff]  ;;  %v841_v6 = vld [vmem:[%s1092_s1 + $0x6] ss:$0 sm:$0xff]  ;;  %v846_v7 = vld [vmem:[%s1092_s1 + $0x7] ss:$0 sm:$0xff] }
   0xe   : > { %v851_v8 = vld [vmem:[%s1092_s1 + $0x8] ss:$0 sm:$0xff]  ;;  %v856_v9 = vld [vmem:[%s1093_s2] ss:$0 sm:$0xff]  ;;  %s739_s7 = smul.u32 960, %s1096_s13  ;;  %s732_s8 = sshll.u32 %s1096_s13, 7 }
   0xf   : > { %vm230_vm1 = vcmask 261120   ;;  %s861_s11 = scalar_lea.vmem %s1094_s3, %s732_s8  ;;  %v777_v10 = vmov 0.0   ;;  %v778_v11 = vmov 0  }
  0x10   : > { %231 = vst.msk [vmem:[#allocation2] sm:$0xff] %vm230_vm1, %v777_v10  ;;  %232 = vst.msk [vmem:[#allocation2 + $0x8] sm:$0xff] %vm230_vm1, %v777_v10  ;;  %s870_s15 = scalar_lea.vmem %s1091_s0, %s739_s7 }
  0x11   : > { %233 = vst.msk [vmem:[#allocation2 + $0x10] sm:$0xff] %vm230_vm1, %v777_v10  ;;  %234 = vst.msk [vmem:[#allocation2 + $0x18] sm:$0xff] %vm230_vm1, %v777_v10 }
  0x12   : > { %225 = vst.msk [vmem:[%s861_s11] sm:$0xf] %vm224_vm0, %v778_v11  ;;  %226 = vst.msk [vmem:[%s861_s11 + $0x4] sm:$0xf] %vm224_vm0, %v778_v11 }
  0x13   : > { %703 = vst.msk [vmem:[%s861_s11 + $0x78] sm:$0xf] %vm224_vm0, %v778_v11  ;;  %704 = vst.msk [vmem:[%s861_s11 + $0x7c] sm:$0xf] %vm224_vm0, %v778_v11 }
  0x14 LB: >> { %v779_v12 = vmov 0   ;;  %s733_s17 = sshll.u32 %s775_s16, 6  ;;  %v272_v29 = vlaneseq  ;;  %s727_s19 = sshll.u32 %s775_s16, 3  ;;  %s775_s16 = sphi %s880_s16, %s240_s16  }
  0x15   : >> { %760 = vset.pattern.permute.xlu1 %v779_v12  ;;  %759 = vset.pattern.permute.xlu0 %v779_v12  ;;  %s243_s18 = scalar_lea.vmem %s870_s15, %s733_s17  ;;  %s654_s20 = scalar_lea.vmem %s861_s11, %s727_s19 }
  0x16   : >> { %v246_v13 = vld [vmem:[%s243_s18 + $0x10] sm:$0xff]  ;;  %v244_v14 = vld [vmem:[%s243_s18] sm:$0xff]  ;;  %v247_v15 = vld [vmem:[%s243_s18 + $0x18] sm:$0xff]  ;;  %v887_v32 = vshrl.u32 %v272_v29, 7  ;;  %s240_s16 = sadd.s32 1, %s775_s16  }
  0x17   : >> { %260 = vperm.xlu1 %760, %v246_v13   ;;  %250 = vperm.xlu0 %759, %v244_v14   ;;  %v245_v16 = vld [vmem:[%s243_s18 + $0x8] sm:$0xff]  ;;  %v709_v18 = vld [vmem:[%s243_s18 + $0x20] sm:$0xff]  ;;  %v712_v19 = vld [vmem:[%s243_s18 + $0x38] sm:$0xff]  ;;  %p237_p4 = scmp.ge.s32.totalorder %s240_s16, 14  }
  0x18   : >> { %v710_v17 = vld [vmem:[%s243_s18 + $0x28] sm:$0xff]  ;;  %v711_v20 = vld [vmem:[%s243_s18 + $0x30] sm:$0xff]  ;;  %v715_v22 = vld [vmem:[%s243_s18 + $0x40] sm:$0xff]  ;;  %vm274_vm2 = vcmp.lt.s32.totalorder %v887_v32, 7  ;;  %vm283_vm3 = vcmp.lt.s32.totalorder %v887_v32, 6 }
  0x19   : >> { %v716_v21 = vld [vmem:[%s243_s18 + $0x48] sm:$0xff]  ;;  %v718_v23 = vld [vmem:[%s243_s18 + $0x58] sm:$0xff]  ;;  %v717_v24 = vld [vmem:[%s243_s18 + $0x50] sm:$0xff] }
  0x1a   : >> { %v722_v25 = vld [vmem:[%s243_s18 + $0x68] sm:$0xff]  ;;  %v721_v26 = vld [vmem:[%s243_s18 + $0x60] sm:$0xff]  ;;  %v724_v27 = vld [vmem:[%s243_s18 + $0x78] sm:$0xff] }
  0x1b   : >> { %265 = vperm.xlu1 %760, %v247_v15   ;;  %255 = vperm.xlu0 %759, %v245_v16   ;;  %v723_v28 = vld [vmem:[%s243_s18 + $0x70] sm:$0xff] }
  0x1f   : >> { %302 = vperm.xlu1 %760, %v710_v17   ;;  %297 = vperm.xlu0 %759, %v709_v18  }
  0x23   : >> { %312 = vperm.xlu1 %760, %v712_v19   ;;  %307 = vperm.xlu0 %759, %v711_v20  }
  0x27   : >> { %345 = vperm.xlu1 %760, %v716_v21   ;;  %340 = vperm.xlu0 %759, %v715_v22  }
  0x2b   : >> { %355 = vperm.xlu1 %760, %v718_v23   ;;  %350 = vperm.xlu0 %759, %v717_v24  }
  0x2f   : >> { %388 = vperm.xlu1 %760, %v722_v25   ;;  %383 = vperm.xlu0 %759, %v721_v26  }
  0x33   : >> { %398 = vperm.xlu1 %760, %v724_v27   ;;  %393 = vperm.xlu0 %759, %v723_v28  }
  0x92   : >> { %v261_v30 = vpop.permute.xlu1 %260  ;;  %v251_v31 = vpop.permute.xlu0 %250 }
  0x93   : >> { %v268_v35 = vrot.slane %v251_v31, 1  ;;  %v270_v38 = vrot.slane %v261_v30, 1  ;;  %v281_v41 = vrot.slane %v261_v30, 2  ;;  %v279_v42 = vrot.slane %v251_v31, 2 }
  0x94   : >> { %v417_v43 = vmul.f32 %v811_v0, %v251_v31  ;;  %v419_v14 = vmul.f32 %v811_v0, %v261_v30 }
  0x96   : >> { %v266_v33 = vpop.permute.xlu1 %265  ;;  %v256_v34 = vpop.permute.xlu0 %255 }
  0x97   : >> { %v271_v36 = vrot.slane %v266_v33, 1  ;;  %v269_v37 = vrot.slane %v256_v34, 1  ;;  %v282_v39 = vrot.slane %v266_v33, 2  ;;  %v280_v40 = vrot.slane %v256_v34, 2 }
  0x98   : >> { %v420_v46 = vmul.f32 %v811_v0, %v266_v33  ;;  %v418_v48 = vmul.f32 %v811_v0, %v256_v34 }
  0x99   : >> { %v278_v44 = vsel %vm274_vm2, %v271_v36, %v268_v35  ;;  %v275_v45 = vsel %vm274_vm2, %v270_v38, %v271_v36  ;;  %v276_v50 = vsel %vm274_vm2, %v269_v37, %v270_v38  ;;  %v277_v51 = vsel %vm274_vm2, %v268_v35, %v269_v37 }
  0x9a   : >> { %v436_v47 = vmul.f32 %v816_v1, %v278_v44  ;;  %v899_v49 = vpop.permute.xlu1 %302  ;;  %v285_v52 = vsel %vm283_vm3, %v280_v40, %v281_v41  ;;  %v286_v53 = vsel %vm283_vm3, %v279_v42, %v280_v40  ;;  %v284_v54 = vsel %vm283_vm3, %v281_v41, %v282_v39  ;;  %v298_v58 = vpop.permute.xlu0 %297 }
  0x9b   : >> { %v287_v55 = vsel %vm283_vm3, %v282_v39, %v279_v42  ;;  %v433_v56 = vmul.f32 %v816_v1, %v277_v51  ;;  %v434_v57 = vmul.f32 %v816_v1, %v276_v50  ;;  %v435_v59 = vmul.f32 %v816_v1, %v275_v45 }
  0x9c   : >> { %v440_v60 = vadd.f32 %v436_v47, %v420_v46  ;;  %v449_v61 = vmul.f32 %v821_v2, %v286_v53  ;;  %v316_v62 = vrot.slane %v899_v49, 1  ;;  %v450_v11 = vmul.f32 %v821_v2, %v285_v52 }
  0x9d   : >> { %v437_v63 = vadd.f32 %v433_v56, %v417_v43  ;;  %v438_v10 = vadd.f32 %v434_v57, %v418_v48  ;;  %v324_v12 = vrot.slane %v899_v49, 2  ;;  %v451_v15 = vmul.f32 %v821_v2, %v284_v54 }
  0x9e   : >> { %v313_v13 = vpop.permute.xlu1 %312  ;;  %v315_v16 = vrot.slane %v298_v58, 1  ;;  %v323_v17 = vrot.slane %v298_v58, 2  ;;  %v452_v18 = vmul.f32 %v821_v2, %v287_v55  ;;  %v439_v22 = vadd.f32 %v435_v59, %v419_v14  ;;  %v308_v35 = vpop.permute.xlu0 %307 }
  0x9f   : >> { %v454_v19 = vadd.f32 %v450_v11, %v438_v10  ;;  %v453_v20 = vadd.f32 %v449_v61, %v437_v63  ;;  %v318_v21 = vrot.slane %v313_v13, 1  ;;  %v465_v24 = vmul.f32 %v826_v3, %v298_v58 }
  0xa0   : >> { %v321_v23 = vsel %vm274_vm2, %v315_v16, %v316_v62  ;;  %v326_v25 = vrot.slane %v313_v13, 2  ;;  %v456_v26 = vadd.f32 %v452_v18, %v440_v60  ;;  %v466_v27 = vmul.f32 %v826_v3, %v899_v49 }
  0xa1   : >> { %v329_v28 = vsel %vm283_vm3, %v323_v17, %v324_v12  ;;  %v441_v29 = vmul.f32 %v816_v1, %v321_v23  ;;  %v425_v30 = vmul.f32 %v811_v0, %v298_v58  ;;  %v469_v31 = vadd.f32 %v465_v24, %v453_v20 }
  0xa2   : >> { %v322_v33 = vsel %vm274_vm2, %v318_v21, %v315_v16  ;;  %v330_v34 = vsel %vm283_vm3, %v326_v25, %v323_v17  ;;  %v426_v36 = vmul.f32 %v811_v0, %v899_v49  ;;  %v470_v37 = vadd.f32 %v466_v27, %v454_v19  ;;  %v945_v48 = vpop.permute.xlu1 %345 }
  0xa3   : >> { %v428_v38 = vmul.f32 %v811_v0, %v313_v13  ;;  %v468_v39 = vmul.f32 %v826_v3, %v313_v13  ;;  %v445_v40 = vadd.f32 %v441_v29, %v425_v30  ;;  %v457_v41 = vmul.f32 %v821_v2, %v329_v28  ;;  %v963_v13 = vpop.permute.xlu0 %340 }
  0xa4   : >> { %v481_v42 = vmul.f32 %v831_v4, %v321_v23  ;;  %v497_v43 = vmul.f32 %v836_v5, %v329_v28  ;;  %v444_v44 = vmul.f32 %v816_v1, %v322_v33  ;;  %v460_v45 = vmul.f32 %v821_v2, %v330_v34 }
  0xa5   : >> { %v317_v46 = vrot.slane %v308_v35, 1  ;;  %v325_v47 = vrot.slane %v308_v35, 2  ;;  %v484_v50 = vmul.f32 %v831_v4, %v322_v33  ;;  %v455_v51 = vadd.f32 %v451_v15, %v439_v22 }
  0xa6   : >> { %v485_v49 = vadd.f32 %v481_v42, %v469_v31  ;;  %v467_v52 = vmul.f32 %v826_v3, %v308_v35  ;;  %v472_v53 = vadd.f32 %v468_v39, %v456_v26  ;;  %v500_v54 = vmul.f32 %v836_v5, %v330_v34  ;;  %v969_v20 = vpop.permute.xlu1 %355 }
  0xa7   : >> { %v319_v55 = vsel %vm274_vm2, %v317_v46, %v318_v21  ;;  %v320_v56 = vsel %vm274_vm2, %v316_v62, %v317_v46  ;;  %v327_v57 = vsel %vm283_vm3, %v325_v47, %v326_v25  ;;  %v328_v58 = vsel %vm283_vm3, %v324_v12, %v325_v47 }
  0xa8   : >> { %v442_v59 = vmul.f32 %v816_v1, %v320_v56  ;;  %v443_v60 = vmul.f32 %v816_v1, %v319_v55  ;;  %v448_v61 = vadd.f32 %v444_v44, %v428_v38  ;;  %v427_v63 = vmul.f32 %v811_v0, %v308_v35  ;;  %v993_v44 = vpop.permute.xlu0 %350 }
  0xa9   : >> { %v482_v10 = vmul.f32 %v831_v4, %v320_v56  ;;  %v359_v11 = vrot.slane %v945_v48, 1  ;;  %v471_v62 = vadd.f32 %v467_v52, %v455_v51  ;;  %v483_v14 = vmul.f32 %v831_v4, %v319_v55 }
  0xaa   : >> { %v367_v15 = vrot.slane %v945_v48, 2  ;;  %v446_v16 = vadd.f32 %v442_v59, %v426_v36  ;;  %v488_v12 = vadd.f32 %v484_v50, %v472_v53  ;;  %v458_v17 = vmul.f32 %v821_v2, %v328_v58  ;;  %v1001_v52 = vpop.permute.xlu1 %388 }
  0xab   : >> { %v459_v18 = vmul.f32 %v821_v2, %v327_v57  ;;  %v486_v19 = vadd.f32 %v482_v10, %v470_v37  ;;  %v447_v21 = vadd.f32 %v443_v60, %v427_v63  ;;  %v498_v22 = vmul.f32 %v836_v5, %v328_v58 }
  0xac   : >> { %v501_v23 = vadd.f32 %v497_v43, %v485_v49  ;;  %v358_v24 = vrot.slane %v963_v13, 1  ;;  %v499_v25 = vmul.f32 %v836_v5, %v327_v57  ;;  %v462_v26 = vadd.f32 %v458_v17, %v446_v16 }
  0xad   : >> { %v366_v27 = vrot.slane %v963_v13, 2  ;;  %v513_v28 = vmul.f32 %v841_v6, %v963_v13  ;;  %v487_v29 = vadd.f32 %v483_v14, %v471_v62  ;;  %v474_v30 = vmul.f32 %v826_v3, %v945_v48 }
  0xae   : >> { %v364_v31 = vsel %vm274_vm2, %v358_v24, %v359_v11  ;;  %v361_v33 = vrot.slane %v969_v20, 1  ;;  %v502_v34 = vadd.f32 %v498_v22, %v486_v19  ;;  %v514_v35 = vmul.f32 %v841_v6, %v945_v48 }
  0xaf   : >> { %v461_v36 = vadd.f32 %v457_v41, %v445_v40  ;;  %v372_v37 = vsel %vm283_vm3, %v366_v27, %v367_v15  ;;  %v473_v38 = vmul.f32 %v826_v3, %v963_v13  ;;  %v517_v39 = vadd.f32 %v513_v28, %v501_v23 }
  0xb0   : >> { %v529_v42 = vmul.f32 %v846_v7, %v364_v31  ;;  %v365_v43 = vsel %vm274_vm2, %v361_v33, %v358_v24  ;;  %v478_v46 = vadd.f32 %v474_v30, %v462_v26  ;;  %v545_v47 = vmul.f32 %v851_v8, %v372_v37 }
  0xb1   : >> { %v504_v40 = vadd.f32 %v500_v54, %v488_v12  ;;  %v516_v41 = vmul.f32 %v841_v6, %v969_v20  ;;  %v464_v49 = vadd.f32 %v460_v45, %v448_v61  ;;  %v476_v50 = vmul.f32 %v826_v3, %v969_v20 }
  0xb2   : >> { %v533_v48 = vadd.f32 %v529_v42, %v517_v39  ;;  %v532_v51 = vmul.f32 %v846_v7, %v365_v43  ;;  %v463_v55 = vadd.f32 %v459_v18, %v447_v21  ;;  %v360_v56 = vrot.slane %v993_v44, 1 }
  0xb3   : >> { %v520_v53 = vadd.f32 %v516_v41, %v504_v40  ;;  %v368_v57 = vrot.slane %v993_v44, 2  ;;  %v503_v54 = vadd.f32 %v499_v25, %v487_v29  ;;  %v475_v59 = vmul.f32 %v826_v3, %v993_v44  ;;  %v399_v25 = vpop.permute.xlu1 %398 }
  0xb4   : >> { %v549_v58 = vadd.f32 %v545_v47, %v533_v48  ;;  %v515_v45 = vmul.f32 %v841_v6, %v993_v44  ;;  %v477_v60 = vadd.f32 %v473_v38, %v461_v36  ;;  %v489_v61 = vmul.f32 %v831_v4, %v364_v31 }
  0xb5   : >> { %v369_v63 = vrot.slane %v969_v20, 2  ;;  %v363_v10 = vsel %vm274_vm2, %v359_v11, %v360_v56  ;;  %v518_v62 = vadd.f32 %v514_v35, %v502_v34  ;;  %v362_v14 = vsel %vm274_vm2, %v360_v56, %v361_v33  ;;  %v384_v20 = vpop.permute.xlu0 %383 }
  0xb6   : >> { %v371_v16 = vsel %vm283_vm3, %v367_v15, %v368_v57  ;;  %v490_v12 = vmul.f32 %v831_v4, %v363_v10  ;;  %v1019_v17 = vadd.f32 %v856_v9, %v549_v58  ;;  %v480_v18 = vadd.f32 %v476_v50, %v464_v49 }
  0xb7   : >> { %v536_v19 = vadd.f32 %v532_v51, %v520_v53  ;;  %v402_v21 = vrot.slane %v1001_v52, 1  ;;  %v479_v22 = vadd.f32 %v475_v59, %v463_v55  ;;  %v519_v23 = vadd.f32 %v515_v45, %v503_v54 }
  0xb8   : >> { %v530_v11 = vmul.f32 %v846_v7, %v363_v10  ;;  %v410_v24 = vrot.slane %v1001_v52, 2  ;;  %v531_v26 = vmul.f32 %v846_v7, %v362_v14  ;;  %v546_v15 = vmul.f32 %v851_v8, %v371_v16 }
  0xb9   : >> { %v493_v28 = vadd.f32 %v489_v61, %v477_v60  ;;  %v505_v29 = vmul.f32 %v836_v5, %v372_v37  ;;  %v494_v30 = vadd.f32 %v490_v12, %v478_v46  ;;  %v401_v31 = vrot.slane %v384_v20, 1 }
  0xba   : >> { %v409_v33 = vrot.slane %v384_v20, 2  ;;  %v521_v34 = vmul.f32 %v841_v6, %v384_v20  ;;  %v565_v35 = vmax.f32 %v1019_v17, 0.0  ;;  %v506_v36 = vmul.f32 %v836_v5, %v371_v16 }
  0xbb   : >> { %v509_v38 = vadd.f32 %v505_v29, %v493_v28  ;;  %v404_v39 = vrot.slane %v399_v25, 1  ;;  %v522_v42 = vmul.f32 %v841_v6, %v1001_v52  ;;  %v407_v44 = vsel %vm274_vm2, %v401_v31, %v402_v21 }
  0xbc   : >> { %v415_v37 = vsel %vm283_vm3, %v409_v33, %v410_v24  ;;  %v373_v46 = vsel %vm283_vm3, %v369_v63, %v366_v27  ;;  %v534_v47 = vadd.f32 %v530_v11, %v518_v62  ;;  %v537_v41 = vmul.f32 %v846_v7, %v407_v44  ;;  %v394_v27 = vpop.permute.xlu0 %393 }
  0xbd   : >> { %v525_v40 = vadd.f32 %v521_v34, %v509_v38  ;;  %v412_v48 = vrot.slane %v399_v25, 2  ;;  %v535_v49 = vadd.f32 %v531_v26, %v519_v23  ;;  %v510_v50 = vadd.f32 %v506_v36, %v494_v30 }
  0xbe   : >> { %v408_v51 = vsel %vm274_vm2, %v404_v39, %v401_v31  ;;  %v492_v52 = vmul.f32 %v831_v4, %v365_v43  ;;  %v553_v55 = vmul.f32 %v851_v8, %v415_v37  ;;  %v508_v13 = vmul.f32 %v836_v5, %v373_v46 }
  0xbf   : >> { %v541_v53 = vadd.f32 %v537_v41, %v525_v40  ;;  %v548_v56 = vmul.f32 %v851_v8, %v373_v46  ;;  %v524_v54 = vmul.f32 %v841_v6, %v399_v25  ;;  %v370_v59 = vsel %vm283_vm3, %v368_v57, %v369_v63 }
  0xc0   : >> { %v496_v58 = vadd.f32 %v492_v52, %v480_v18  ;;  %v491_v45 = vmul.f32 %v831_v4, %v362_v14  ;;  %v416_v43 = vsel %vm283_vm3, %v412_v48, %v409_v33  ;;  %v540_v61 = vmul.f32 %v846_v7, %v408_v51 }
  0xc1   : >> { %v557_v60 = vadd.f32 %v553_v55, %v541_v53  ;;  %v552_v10 = vadd.f32 %v548_v56, %v536_v19  ;;  %v507_v12 = vmul.f32 %v836_v5, %v370_v59  ;;  %v403_v17 = vrot.slane %v394_v27, 1 }
  0xc2   : >> { %v512_v62 = vadd.f32 %v508_v13, %v496_v58  ;;  %v495_v16 = vadd.f32 %v491_v45, %v479_v22  ;;  %v550_v18 = vadd.f32 %v546_v15, %v534_v47  ;;  %v526_v20 = vadd.f32 %v522_v42, %v510_v50 }
  0xc3   : >> { %v569_v23 = vadd.f32 %v856_v9, %v557_v60  ;;  %v411_v11 = vrot.slane %v394_v27, 2  ;;  %v405_v14 = vsel %vm274_vm2, %v403_v17, %v404_v39  ;;  %v406_v25 = vsel %vm274_vm2, %v402_v21, %v403_v17 }
  0xc4   : >> { %v528_v57 = vadd.f32 %v524_v54, %v512_v62  ;;  %v511_v63 = vadd.f32 %v507_v12, %v495_v16  ;;  %v556_v19 = vmul.f32 %v851_v8, %v416_v43  ;;  %v564_v22 = vadd.f32 %v856_v9, %v552_v10 }
  0xc5   : >> { %v573_v26 = vmax.f32 %v569_v23, 0.0  ;;  %v547_v28 = vmul.f32 %v851_v8, %v370_v59  ;;  %v414_v29 = vsel %vm283_vm3, %v410_v24, %v411_v11  ;;  %v523_v30 = vmul.f32 %v841_v6, %v394_v27 }
  0xc6   : >> { %v544_v15 = vadd.f32 %v540_v61, %v528_v57  ;;  %v538_v31 = vmul.f32 %v846_v7, %v406_v25  ;;  %v413_v21 = vsel %vm283_vm3, %v411_v11, %v412_v48  ;;  %v539_v36 = vmul.f32 %v846_v7, %v405_v14 }
  0xc7   : >> { %v577_v33 = vmax.f32 %v565_v35, %v573_v26  ;;  %v551_v34 = vadd.f32 %v547_v28, %v535_v49  ;;  %v527_v39 = vadd.f32 %v523_v30, %v511_v63  ;;  %v554_v44 = vmul.f32 %v851_v8, %v414_v29 }
  0xc8   : >> { %v560_v38 = vadd.f32 %v556_v19, %v544_v15  ;;  %v542_v42 = vadd.f32 %v538_v31, %v526_v20  ;;  %v562_v37 = vadd.f32 %v856_v9, %v550_v18  ;;  %v555_v35 = vmul.f32 %v851_v8, %v413_v21 }
  0xc9   : >> { %581 = vst.msk [vmem:[#allocation2 + $0x2] sm:$0xff] %vm230_vm1, %v577_v33  ;;  %v543_v46 = vadd.f32 %v539_v36, %v527_v39  ;;  %v568_v40 = vmax.f32 %v564_v22, 0.0  ;;  %v563_v41 = vadd.f32 %v856_v9, %v551_v34 }
  0xca   : >> { %v572_v24 = vadd.f32 %v856_v9, %v560_v38  ;;  %v558_v47 = vadd.f32 %v554_v44, %v542_v42  ;;  %v566_v51 = vmax.f32 %v562_v37, 0.0 }
  0xcb   : >> { %v559_v48 = vadd.f32 %v555_v35, %v543_v46  ;;  %v567_v55 = vmax.f32 %v563_v41, 0.0 }
  0xcc   : >> { %v576_v32 = vmax.f32 %v572_v24, 0.0  ;;  %v570_v49 = vadd.f32 %v856_v9, %v558_v47 }
  0xcd   : >> { %v571_v52 = vadd.f32 %v856_v9, %v559_v48 }
  0xce   : >> { %v580_v50 = vmax.f32 %v568_v40, %v576_v32  ;;  %v574_v53 = vmax.f32 %v570_v49, 0.0 }
  0xcf   : >> { %v575_v13 = vmax.f32 %v571_v52, 0.0 }
  0xd0   : >> { %584 = vst.msk [vmem:[#allocation2 + $0x1a] sm:$0xf] %vm224_vm0, %v580_v50  ;;  %v578_v56 = vmax.f32 %v566_v51, %v574_v53 }
  0xd1   : >> { %v579_v27 = vmax.f32 %v567_v55, %v575_v13 }
  0xd2   : >> { %582 = vst.msk [vmem:[#allocation2 + $0xa] sm:$0xff] %vm230_vm1, %v578_v56 }
  0xd3   : >> { %583 = vst.msk [vmem:[#allocation2 + $0x12] sm:$0xff] %vm230_vm1, %v579_v27 }
  0xd9   : >> { %v585_v58 = vld [vmem:[#allocation2] ss:$2 sm:$0xff]  ;;  %v589_v54 = vld [vmem:[#allocation2 + $0x1] ss:$2 sm:$0xff] }
  0xda   : >> { %v592_v59 = vmax.f32 %v585_v58, %v589_v54  ;;  %v587_v45 = vld [vmem:[#allocation2 + $0x10] ss:$2 sm:$0xff]  ;;  %v591_v60 = vld [vmem:[#allocation2 + $0x11] ss:$2 sm:$0xff] }
  0xdb   : >> { %v593_v43 = vmax.f32 %v587_v45, %v591_v60  ;;  %239 = sbr.rel (!%p237_p4) target bundleno = 20 (0x14), region = 78 }
  0xdc   : >> { %v737_v61 = vpack.c.bf16 %v592_v59, %v592_v59 }
  0xdd   : >> { %v738_v10 = vpack.c.bf16 %v593_v43, %v593_v43 }
  0xde   : >> { %728 = vst.msk [vmem:[%s654_s20 + $0x8] sm:$0xf] %vm224_vm0, %v737_v61 }
  0xdf   : >> { %729 = vst.msk [vmem:[%s654_s20 + $0xc] sm:$0xf] %vm224_vm0, %v738_v10 }
  0xe0 PF: > { %s13_s12 = sadd.s32 1, %s771_s12  }
  0xe1   : > { %p10_p5 = scmp.ge.s32.totalorder %s13_s12, 4  }
  0xe3   :  { %12 = sbr.rel (!%p10_p5) target bundleno = 1 (0x1), region = 89 }

// kernel: cnn_forward.4
= control target key start
LH: loop header
LB: loop body
LE: loop exit
PB: predicated region body
PF: predicated region fallthrough
CT: control target
= control target key end

     0   :  { %s1737_s12 = smov 0   ;;  %s2122_s0 = inlined_call_operand.vmem [shape: bf16[2,16,16,32], index: 0, kind: input, shape index: {}]   ;;  %s2123_s1 = inlined_call_operand.vmem [shape: bf16[9,32,64], index: 1, kind: input, shape index: {}]   ;;  %s2124_s2 = inlined_call_operand.vmem [shape: f32[1,64], index: 2, kind: input, shape index: {}]   ;;  %s2125_s3 = inlined_call_operand.vmem [shape: bf16[2,7,7,64], index: 3, kind: output, shape index: {}]  }
   0x1 LB: > { %s1351_s13 = sadd.s32 4294967295, %s1709_s12   ;;  %p1355_p0 = scmp.ge.s32.totalorder %s1709_s12, 1  ;;  %s1709_s12 = sphi %s1737_s12, %s13_s12  }
   0x2   : > { %p137_p1 = scmp.lt.s32.totalorder %s1709_s12, 3 }
   0x4   : > { %p138_p2 = pnand %p1355_p0, %p137_p1 }
   0x5   : > { %p161_p3 = scmp.lt.s32.totalorder (!%p138_p2), %s1351_s13, 1  ;;  %s1940_s21 = smov (!%p138_p2), 0  }
   0x6   : > { %141 = sbr.rel (%p138_p2) target bundleno = 324 (0x144), region = 32 }
   0xb   : > { %v1748_v0 = vld [vmem:[%s2123_s1] sm:$0xf]  ;;  %v1753_v1 = vld [vmem:[%s2123_s1 + $0x4] sm:$0xf]  ;;  %v1758_v2 = vld [vmem:[%s2123_s1 + $0x8] sm:$0xf] }
   0xc   : > { %2126 = vst [vmem:[#allocation3_spill] sm:$0xff] %v1748_v0  ;;  %2127 = vst [vmem:[#allocation4_spill] sm:$0xff] %v1753_v1  ;;  %v1763_v3 = vld [vmem:[%s2123_s1 + $0xc] sm:$0xf]  ;;  %v1768_v4 = vld [vmem:[%s2123_s1 + $0x10] sm:$0xf] }
   0xd   : > { %2128 = vst [vmem:[#allocation5_spill] sm:$0xff] %v1758_v2  ;;  %2129 = vst [vmem:[#allocation6_spill] sm:$0xff] %v1763_v3  ;;  %s2163_s13 = smov (!%p161_p3, %s1351_s13), 1  ;;  %v1773_v5 = vld [vmem:[%s2123_s1 + $0x14] sm:$0xf] }
   0xe   : > { %2130 = vst [vmem:[#allocation7_spill] sm:$0xff] %v1768_v4  ;;  %2131 = vst [vmem:[#allocation8_spill] sm:$0xff] %v1773_v5  ;;  %v1778_v6 = vld [vmem:[%s2123_s1 + $0x18] sm:$0xf]  ;;  %v1783_v7 = vld [vmem:[%s2123_s1 + $0x1c] sm:$0xf] }
   0xf   : > { %2132 = vst [vmem:[#allocation9_spill] sm:$0xff] %v1778_v6  ;;  %2133 = vst [vmem:[#allocation10_spill] sm:$0xff] %v1783_v7  ;;  %v1788_v8 = vld [vmem:[%s2123_s1 + $0x20] sm:$0xf]  ;;  %v1793_v9 = vld [vmem:[%s2123_s1 + $0x24] sm:$0xf] }
  0x10   : > { %2134 = vst [vmem:[#allocation11_spill] sm:$0xff] %v1788_v8  ;;  %2135 = vst [vmem:[#allocation12_spill] sm:$0xff] %v1793_v9  ;;  %s1464_s7 = sshll.u32 %s2163_s13, 7  ;;  %s1668_s8 = smul.u32 28, %s2163_s13  ;;  %v1798_v10 = vld [vmem:[%s2123_s1 + $0x28] sm:$0xf] }
  0x11   : > { %2136 = vst [vmem:[#allocation13_spill] sm:$0xff] %v1798_v10  ;;  %v1803_v11 = vld [vmem:[%s2123_s1 + $0x2c] sm:$0xf]  ;;  %s1808_s17 = scalar_lea.vmem %s2122_s0, %s1464_s7  ;;  %v1813_v12 = vld [vmem:[%s2123_s1 + $0x30] sm:$0xf] }
  0x12   : > { %2137 = vst [vmem:[#allocation14_spill] sm:$0xff] %v1803_v11  ;;  %2138 = vst [vmem:[#allocation15_spill] sm:$0xff] %v1813_v12  ;;  %v1818_v13 = vld [vmem:[%s2123_s1 + $0x34] sm:$0xf]  ;;  %v1823_v14 = vld [vmem:[%s2123_s1 + $0x38] sm:$0xf]  ;;  %s1828_s25 = scalar_lea.vmem %s2125_s3, %s1668_s8 }
  0x13   : > { %2139 = vst [vmem:[#allocation16_spill] sm:$0xff] %v1818_v13  ;;  %2140 = vst [vmem:[#allocation17_spill] sm:$0xff] %v1823_v14  ;;  %v1833_v15 = vld [vmem:[%s2123_s1 + $0x3c] sm:$0xf]  ;;  %v1838_v16 = vld [vmem:[%s2123_s1 + $0x40] sm:$0xf] }
  0x14   : > { %2141 = vst [vmem:[#allocation18_spill] sm:$0xff] %v1833_v15  ;;  %2142 = vst [vmem:[#allocation19_spill] sm:$0xff] %v1838_v16  ;;  %v1843_v17 = vld [vmem:[%s2123_s1 + $0x44] sm:$0xf]  ;;  %v1848_v18 = vld [vmem:[%s2123_s1 + $0x48] sm:$0xf] }
  0x15   : > { %2143 = vst [vmem:[#allocation20_spill] sm:$0xff] %v1843_v17  ;;  %v1853_v19 = vld [vmem:[%s2123_s1 + $0x4c] sm:$0xf]  ;;  %v1858_v20 = vld [vmem:[%s2123_s1 + $0x50] sm:$0xf] }
  0x16   : > { %v1863_v21 = vld [vmem:[%s2123_s1 + $0x54] sm:$0xf]  ;;  %v1868_v22 = vld [vmem:[%s2123_s1 + $0x58] sm:$0xf]  ;;  %v1873_v23 = vld [vmem:[%s2123_s1 + $0x5c] sm:$0xf] }
  0x17   : > { %v1878_v24 = vld [vmem:[%s2123_s1 + $0x60] sm:$0xf]  ;;  %v1883_v25 = vld [vmem:[%s2123_s1 + $0x64] sm:$0xf]  ;;  %v1888_v26 = vld [vmem:[%s2123_s1 + $0x68] sm:$0xf] }
  0x18   : > { %v1893_v27 = vld [vmem:[%s2123_s1 + $0x6c] sm:$0xf]  ;;  %v1898_v28 = vld [vmem:[%s2123_s1 + $0x70] sm:$0xf]  ;;  %v1903_v29 = vld [vmem:[%s2123_s1 + $0x74] sm:$0xf] }
  0x19   : > { %v1908_v30 = vld [vmem:[%s2123_s1 + $0x78] sm:$0xf]  ;;  %v1913_v31 = vld [vmem:[%s2123_s1 + $0x7c] sm:$0xf]  ;;  %v1918_v32 = vld [vmem:[%s2123_s1 + $0x80] sm:$0xf] }
  0x1a   : > { %v1923_v33 = vld [vmem:[%s2123_s1 + $0x84] sm:$0xf]  ;;  %v1928_v34 = vld [vmem:[%s2123_s1 + $0x88] sm:$0xf]  ;;  %v1933_v35 = vld [vmem:[%s2123_s1 + $0x8c] sm:$0xf] }
  0x1b   : > { %v1938_v36 = vld [vmem:[%s2124_s2] ss:$0 sm:$0xff] }
  0x1c LB: >> { %v2144_v3 = vld [vmem:[#allocation6_spill] sm:$0xff]  ;;  %v2145_v2 = vld [vmem:[#allocation5_spill] sm:$0xff]  ;;  %v1715_v39 = vmov 0.0   ;;  %v2148_v1 = vld [vmem:[#allocation4_spill] sm:$0xff]  ;;  %s1466_s22 = sshll.u32 %s1713_s21, 4  ;;  %vm1716_vm0 = vmmov 0   ;;  %s1713_s21 = sphi %s1940_s21, %s228_s21  }
  0x1d   : >> { %v1419_v37 = vcombine.low %v2145_v2, %v2144_v3  ;;  %v2146_v7 = vld [vmem:[#allocation10_spill] sm:$0xff]  ;;  %v2147_v6 = vld [vmem:[#allocation9_spill] sm:$0xff]  ;;  %1532 = vmatprep.subr.bf16.mxu1 %v1715_v39  ;;  %1524 = vmatprep.subr.bf16.mxu0 %v1715_v39  ;;  %v2149_v0 = vld [vmem:[#allocation3_spill] sm:$0xff]  ;;  %s1959_s23 = scalar_lea.vmem %s1808_s17, %s1466_s22  ;;  %vm285_vm1 = vcmask 261120   ;;  %vm1258_vm2 = vcmask 523264   ;;  %vm1260_vm3 = vcmask 521216  }
  0x1e   : >> { %v1415_v38 = vcombine.low %v2147_v6, %v2146_v7  ;;  %v1418_v40 = vcombine.low %v2149_v0, %v2148_v1  ;;  %v2150_v5 = vld [vmem:[#allocation8_spill] sm:$0xff]  ;;  %v2151_v4 = vld [vmem:[#allocation7_spill] sm:$0xff]  ;;  %1536 = vmatprep.mubr.msk.bf16.mxu1 %vm1716_vm0, %v1715_v39  ;;  %v233_v42 = vld [vmem:[%s1959_s23] sm:$0xf]  ;;  %1528 = vmatprep.mubr.msk.bf16.mxu0 %vm1716_vm0, %v1715_v39  ;;  %s1461_s24 = sshll.u32 %s1713_s21, 2  ;;  %vm1269_vm4 = vcmask 519168  }
  0x1f   : >> { %1533 = vmatpush3.bf16.msra.mxu1 %v1419_v37  ;;  %v1414_v41 = vcombine.low %v2151_v4, %v2150_v5  ;;  %v234_v43 = vld [vmem:[%s1959_s23 + $0x4] sm:$0x7]  ;;  %v1397_v47 = vld [vmem:[%s1959_s23 + $0x8] sm:$0xf]  ;;  %v1399_v48 = vld [vmem:[%s1959_s23 + $0xc] sm:$0xf]  ;;  %s1268_s26 = scalar_lea.vmem %s1828_s25, %s1461_s24 }
  0x20   : >> { %1525 = vmatpush3.bf16.msra.mxu0 %v1415_v38  ;;  %1534 = vmatprep.subr.bf16.mxu1 %v1715_v39  ;;  %v235_v44 = vld [vmem:[%s1959_s23 + $0x4] sm:$0xf]  ;;  %v1417_v46 = vcombine.low %v233_v42, %v234_v43  ;;  %v1421_v51 = vcombine.low %v1397_v47, %v1399_v48  ;;  %v1398_v54 = vld [vmem:[%s1959_s23 + $0xc] sm:$0x7]  ;;  %v1400_v60 = vld [vmem:[%s1959_s23 + $0x8] sm:$0xe] }
  0x21   : >> { %1526 = vmatprep.subr.bf16.mxu0 %v1715_v39  ;;  %v1413_v45 = vcombine.low %v233_v42, %v235_v44  ;;  %v1423_v56 = vcombine.low %v1397_v47, %v1398_v54  ;;  %v2152_v11 = vld [vmem:[#allocation14_spill] sm:$0xff]  ;;  %v2153_v10 = vld [vmem:[#allocation13_spill] sm:$0xff]  ;;  %v1429_v62 = vcombine.low %v1400_v60, %v1399_v48  ;;  %v2154_v9 = vld [vmem:[#allocation12_spill] sm:$0xff]  ;;  %v1447_v60 = vcombine.low %v1888_v26, %v1893_v27  ;;  %s228_s21 = sadd.s32 1, %s1713_s21  }
  0x22   : >> { %v397_v53 = vshll.u32 %v1421_v51, 16  ;;  %v395_v57 = vshrl.u32 %v1421_v51, 16  ;;  %v1427_v59 = vcombine.low %v2153_v10, %v2152_v11  ;;  %v236_v63 = vld [vmem:[%s1959_s23] sm:$0xe]  ;;  %v2155_v8 = vld [vmem:[#allocation11_spill] sm:$0xff]  ;;  %v2156_v15 = vld [vmem:[#allocation18_spill] sm:$0xff] }
  0x23   : >> { %1535 = vmatpush3.bf16.msra.mxu1 %v1418_v40  ;;  %v267_v49 = vshrl.u32 %v1413_v45, 16  ;;  %v269_v50 = vshll.u32 %v1413_v45, 16  ;;  %v2157_v14 = vld [vmem:[#allocation17_spill] sm:$0xff]  ;;  %v1405_v42 = vld [vmem:[%s1959_s23 + $0x14] sm:$0xf]  ;;  %v2158_v13 = vld [vmem:[#allocation16_spill] sm:$0xff] }
  0x24   : >> { %1527 = vmatpush3.bf16.msra.mxu0 %v1414_v41  ;;  %1548 = vmatprep.subr.bf16.mxu1 %v1715_v39  ;;  %v399_v58 = vrot.slane %v397_v53, 1  ;;  %v1403_v43 = vld [vmem:[%s1959_s23 + $0x10] sm:$0xf]  ;;  %v1404_v47 = vld [vmem:[%s1959_s23 + $0x14] sm:$0x7]  ;;  %v2160_v17 = vld [vmem:[#allocation20_spill] sm:$0xff] }
  0x25   : >> { %1540 = vmatprep.subr.bf16.mxu0 %v1715_v39  ;;  %v271_v52 = vrot.slane %v269_v50, 1  ;;  %v1439_v45 = vcombine.low %v1403_v43, %v1405_v42  ;;  %v2159_v12 = vld [vmem:[#allocation15_spill] sm:$0xff]  ;;  %v2017_v48 = vcombine.low %v1403_v43, %v1404_v47  ;;  %v1437_v50 = vcombine.low %v1848_v18, %v1853_v19  ;;  %p225_p4 = scmp.ge.s32.totalorder %s228_s21, 7  }
  0x26   : >> { %1537 = vmatmul.mubr.msk.bf16.vlgmr.msra.gmra.mxu1 %vm285_vm1, %v1417_v46  ;;  %v1986_v61 = vor.u32 %v399_v58, %v395_v57  ;;  %v1431_v46 = vcombine.low %v2159_v12, %v2158_v13  ;;  %v2161_v16 = vld [vmem:[#allocation19_spill] sm:$0xff]  ;;  %v1441_v58 = vcombine.low %v1858_v20, %v1863_v21  ;;  %v1452_v43 = vcombine.low %v1908_v30, %v1913_v31 }
  0x27   : >> { %1549 = vmatpush3.bf16.msra.mxu1 %v1419_v37  ;;  %1552 = vmatprep.mubr.msk.bf16.mxu1 %vm1716_vm0, %v1715_v39  ;;  %v272_v55 = vor.u32 %v271_v52, %v267_v49  ;;  %v1426_v37 = vcombine.low %v2155_v8, %v2154_v9  ;;  %v771_v49 = vshll.u32 %v1439_v45, 16  ;;  %v769_v51 = vshrl.u32 %v1439_v45, 16  ;;  %v1406_v57 = vld [vmem:[%s1959_s23 + $0x10] sm:$0xe] }
  0x28   : >> { %1550 = vmatprep.subr.bf16.mxu1 %v1715_v39  ;;  %v1436_v53 = vcombine.low %v2161_v16, %v2160_v17  ;;  %v1457_v47 = vcombine.low %v1928_v34, %v1933_v35  ;;  %vm1270_vm5 = vsmask.f32 3328 }
  0x29   : >> { %1529 = vmatmul.mubr.msk.bf16.vlgmr.msra.gmra.mxu0 %vm285_vm1, %v272_v55  ;;  %v773_v52 = vrot.slane %v771_v49, 1  ;;  %v1442_v55 = vcombine.low %v1868_v22, %v1873_v23  ;;  %v1412_v49 = vld [vmem:[%s1959_s23 + $0x18] sm:$0xe]  ;;  %vm1271_vm6 = vmand %vm1269_vm4, %vm1270_vm5 }
  0x2a   : >> { %1541 = vmatpush3.bf16.msra.mxu0 %v1415_v38  ;;  %1544 = vmatprep.mubr.msk.bf16.mxu0 %vm1716_vm0, %v1715_v39  ;;  %v1425_v38 = vcombine.low %v236_v63, %v235_v44  ;;  %v1409_v63 = vld [vmem:[%s1959_s23 + $0x18] sm:$0xf] }
  0x2b   : >> { %1551 = vmatpush3.bf16.msra.mxu1 %v1418_v40  ;;  %1542 = vmatprep.subr.bf16.mxu0 %v1715_v39  ;;  %v1997_v40 = vrot.slane %v1429_v62, 1  ;;  %v2034_v54 = vor.u32 %v773_v52, %v769_v51  ;;  %v1411_v62 = vld [vmem:[%s1959_s23 + $0x1c] sm:$0xf] }
  0x2c   : >> { %1564 = vmatprep.subr.bf16.mxu1 %v1715_v39  ;;  %v495_v44 = vrot.slane %v1425_v38, 1  ;;  %v1410_v38 = vld [vmem:[%s1959_s23 + $0x1c] sm:$0x7] }
  0x2e   : >> { %1553 = vmatmul.mubr.msk.bf16.vlgmr.msra.gmra.mxu1 %vm285_vm1, %v1423_v56  ;;  %1543 = vmatpush3.bf16.msra.mxu0 %v1414_v41  ;;  %v1432_v41 = vcombine.low %v2157_v14, %v2156_v15 }
  0x2f   : >> { %1565 = vmatpush3.bf16.msra.mxu1 %v1427_v59  ;;  %1556 = vmatprep.subr.bf16.mxu0 %v1715_v39 }
  0x30   : >> { %1566 = vmatprep.subr.bf16.mxu1 %v1715_v39  ;;  %1568 = vmatprep.mubr.msk.bf16.mxu1 %vm1716_vm0, %v1715_v39 }
  0x31   : >> { %1545 = vmatmul.mubr.msk.bf16.vlgmr.msra.gmra.mxu0 %vm285_vm1, %v1986_v61 }
  0x32   : >> { %1557 = vmatpush3.bf16.msra.mxu0 %v1427_v59  ;;  %1560 = vmatprep.mubr.msk.bf16.mxu0 %vm1716_vm0, %v1715_v39 }
  0x33   : >> { %1567 = vmatpush3.bf16.msra.mxu1 %v1426_v37  ;;  %1558 = vmatprep.subr.bf16.mxu0 %v1715_v39 }
  0x34   : >> { %1580 = vmatprep.subr.bf16.mxu1 %v1715_v39 }
  0x36   : >> { %1569 = vmatmul.mubr.msk.bf16.vlgmr.msra.gmra.mxu1 %vm285_vm1, %v1997_v40  ;;  %1559 = vmatpush3.bf16.msra.mxu0 %v1426_v37  ;;  %v1454_v37 = vcombine.low %v1409_v63, %v1411_v62 }
  0x37   : >> { %1581 = vmatpush3.bf16.msra.mxu1 %v1432_v41  ;;  %1572 = vmatprep.subr.bf16.mxu0 %v1715_v39 }
  0x38   : >> { %1582 = vmatprep.subr.bf16.mxu1 %v1715_v39  ;;  %1584 = vmatprep.mubr.msk.bf16.mxu1 %vm1716_vm0, %v1715_v39 }
  0x39   : >> { %1561 = vmatmul.mubr.msk.bf16.vlgmr.msra.gmra.mxu0 %vm285_vm1, %v495_v44  ;;  %v1091_v44 = vshrl.u32 %v1454_v37, 16 }
  0x3a   : >> { %1573 = vmatpush3.bf16.msra.mxu0 %v1432_v41  ;;  %1576 = vmatprep.mubr.msk.bf16.mxu0 %vm1716_vm0, %v1715_v39  ;;  %v1449_v41 = vcombine.low %v1409_v63, %v1410_v38 }
  0x3b   : >> { %1583 = vmatpush3.bf16.msra.mxu1 %v1431_v46  ;;  %1574 = vmatprep.subr.bf16.mxu0 %v1715_v39 }
  0x3c   : >> { %1596 = vmatprep.subr.bf16.mxu1 %v1715_v39 }
  0x3e   : >> { %1585 = vmatmul.mubr.msk.bf16.vlgmr.msra.gmra.mxu1 %vm285_vm1, %v2017_v48  ;;  %1575 = vmatpush3.bf16.msra.mxu0 %v1431_v46 }
  0x3f   : >> { %1597 = vmatpush3.bf16.msra.mxu1 %v1437_v50  ;;  %1588 = vmatprep.subr.bf16.mxu0 %v1715_v39 }
  0x40   : >> { %1598 = vmatprep.subr.bf16.mxu1 %v1715_v39  ;;  %1600 = vmatprep.mubr.msk.bf16.mxu1 %vm1716_vm0, %v1715_v39 }
  0x41   : >> { %1577 = vmatmul.mubr.msk.bf16.vlgmr.msra.gmra.mxu0 %vm285_vm1, %v1423_v56  ;;  %v1444_v56 = vcombine.low %v1406_v57, %v1405_v42  ;;  %v1093_v42 = vshll.u32 %v1454_v37, 16 }
  0x42   : >> { %1589 = vmatpush3.bf16.msra.mxu0 %v1437_v50  ;;  %1592 = vmatprep.mubr.msk.bf16.mxu0 %vm1716_vm0, %v1715_v39  ;;  %v1459_v50 = vcombine.low %v1412_v49, %v1411_v62 }
  0x43   : >> { %1599 = vmatpush3.bf16.msra.mxu1 %v1436_v53  ;;  %1590 = vmatprep.subr.bf16.mxu0 %v1715_v39  ;;  %v879_v59 = vrot.slane %v1444_v56, 1  ;;  %v1095_v45 = vrot.slane %v1093_v42, 1 }
  0x44   : >> { %1612 = vmatprep.subr.bf16.mxu1 %v1715_v39  ;;  %v1201_v51 = vrot.slane %v1459_v50, 1 }
  0x45   : >> { %v1096_v46 = vor.u32 %v1095_v45, %v1091_v44 }
  0x46   : >> { %1601 = vmatmul.mubr.msk.bf16.vlgmr.msra.gmra.mxu1 %vm285_vm1, %v2034_v54  ;;  %1591 = vmatpush3.bf16.msra.mxu0 %v1436_v53 }
  0x47   : >> { %1613 = vmatpush3.bf16.msra.mxu1 %v1442_v55  ;;  %1604 = vmatprep.subr.bf16.mxu0 %v1715_v39 }
  0x48   : >> { %1614 = vmatprep.subr.bf16.mxu1 %v1715_v39  ;;  %1616 = vmatprep.mubr.msk.bf16.mxu1 %vm1716_vm0, %v1715_v39 }
  0x49   : >> { %1593 = vmatmul.mubr.msk.bf16.vlgmr.msra.gmra.mxu0 %vm285_vm1, %v1986_v61  ;;  %v1446_v61 = vcombine.low %v1878_v24, %v1883_v25 }
  0x4a   : >> { %1605 = vmatpush3.bf16.msra.mxu0 %v1442_v55  ;;  %1608 = vmatprep.mubr.msk.bf16.mxu0 %vm1716_vm0, %v1715_v39 }
  0x4b   : >> { %1615 = vmatpush3.bf16.msra.mxu1 %v1441_v58  ;;  %1606 = vmatprep.subr.bf16.mxu0 %v1715_v39 }
  0x4c   : >> { %1628 = vmatprep.subr.bf16.mxu1 %v1715_v39 }
  0x4e   : >> { %1617 = vmatmul.mubr.msk.bf16.vlgmr.msra.gmra.mxu1 %vm285_vm1, %v879_v59  ;;  %1607 = vmatpush3.bf16.msra.mxu0 %v1441_v58 }
  0x4f   : >> { %1629 = vmatpush3.bf16.msra.mxu1 %v1447_v60  ;;  %1620 = vmatprep.subr.bf16.mxu0 %v1715_v39 }
  0x50   : >> { %1630 = vmatprep.subr.bf16.mxu1 %v1715_v39  ;;  %1632 = vmatprep.mubr.msk.bf16.mxu1 %vm1716_vm0, %v1715_v39 }
  0x51   : >> { %1609 = vmatmul.mubr.msk.bf16.vlgmr.msra.gmra.mxu0 %vm285_vm1, %v1997_v40  ;;  %v1451_v40 = vcombine.low %v1898_v28, %v1903_v29 }
  0x52   : >> { %1621 = vmatpush3.bf16.msra.mxu0 %v1447_v60  ;;  %1624 = vmatprep.mubr.msk.bf16.mxu0 %vm1716_vm0, %v1715_v39 }
  0x53   : >> { %1631 = vmatpush3.bf16.msra.mxu1 %v1446_v61  ;;  %1622 = vmatprep.subr.bf16.mxu0 %v1715_v39 }
  0x54   : >> { %1644 = vmatprep.subr.bf16.mxu1 %v1715_v39 }
  0x56   : >> { %1633 = vmatmul.mubr.msk.bf16.vlgmr.msra.gmra.mxu1 %vm285_vm1, %v1449_v41  ;;  %1623 = vmatpush3.bf16.msra.mxu0 %v1446_v61 }
  0x57   : >> { %1645 = vmatpush3.bf16.msra.mxu1 %v1452_v43  ;;  %1636 = vmatprep.subr.bf16.mxu0 %v1715_v39 }
  0x58   : >> { %1646 = vmatprep.subr.bf16.mxu1 %v1715_v39  ;;  %1648 = vmatprep.mubr.msk.bf16.mxu1 %vm1716_vm0, %v1715_v39 }
  0x59   : >> { %1625 = vmatmul.mubr.msk.bf16.vlgmr.msra.gmra.mxu0 %vm285_vm1, %v2017_v48  ;;  %v1456_v48 = vcombine.low %v1918_v32, %v1923_v33 }
  0x5a   : >> { %1637 = vmatpush3.bf16.msra.mxu0 %v1452_v43  ;;  %1640 = vmatprep.mubr.msk.bf16.mxu0 %vm1716_vm0, %v1715_v39 }
  0x5b   : >> { %1647 = vmatpush3.bf16.msra.mxu1 %v1451_v40  ;;  %1638 = vmatprep.subr.bf16.mxu0 %v1715_v39 }
  0x5c   : >> { %1660 = vmatprep.subr.bf16.mxu1 %v1715_v39 }
  0x5e   : >> { %1649 = vmatmul.mubr.msk.bf16.vlgmr.msra.gmra.mxu1 %vm285_vm1, %v1096_v46  ;;  %1639 = vmatpush3.bf16.msra.mxu0 %v1451_v40 }
  0x5f   : >> { %1661 = vmatpush3.bf16.msra.mxu1 %v1457_v47  ;;  %1652 = vmatprep.subr.bf16.mxu0 %v1715_v39 }
  0x60   : >> { %1662 = vmatprep.subr.bf16.mxu1 %v1715_v39  ;;  %1664 = vmatprep.mubr.msk.bf16.mxu1 %vm1716_vm0, %v1715_v39 }
  0x61   : >> { %1641 = vmatmul.mubr.msk.bf16.vlgmr.msra.gmra.mxu0 %vm285_vm1, %v2034_v54 }
  0x62   : >> { %1653 = vmatpush3.bf16.msra.mxu0 %v1457_v47  ;;  %1656 = vmatprep.mubr.msk.bf16.mxu0 %vm1716_vm0, %v1715_v39 }
  0x63   : >> { %1663 = vmatpush3.bf16.msra.mxu1 %v1456_v48  ;;  %1654 = vmatprep.subr.bf16.mxu0 %v1715_v39 }
  0x66   : >> { %1665 = vmatmul.mubr.msk.bf16.vlgmr.msra.gmra.mxu1 %vm285_vm1, %v1201_v51  ;;  %1655 = vmatpush3.bf16.msra.mxu0 %v1456_v48 }
  0x69   : >> { %1657 = vmatmul.mubr.msk.bf16.vlgmr.msra.gmra.mxu0 %vm285_vm1, %v879_v59 }
  0xe6   : >> { %v382_v52 = vpop.f32.mrf.mxu1 }
  0xe8   : >> { %v1538_v53 = vpop.f32.mrf.mxu1 }
  0xe9   : >> { %v323_v55 = vpop.f32.mrf.mxu0 }
  0xea   : >> { %v2107_v57 = vpop.f32.mrf.mxu1 }
  0xeb   : >> { %v1530_v56 = vpop.f32.mrf.mxu0 }
  0xec   : >> { %v1539_v54 = vpop.f32.mrf.mxu1 }
  0xed   : >> { %v326_v58 = vpop.f32.mrf.mxu0 }
  0xee   : >> { %v485_v60 = vpop.f32.mrf.mxu1  ;;  %v386_v16 = vadd.f32 %v2107_v57, %v326_v58 }
  0xef   : >> { %v1531_v62 = vpop.f32.mrf.mxu0 }
  0xf0   : >> { %v1554_v63 = vpop.f32.mrf.mxu1 }
  0xf1   : >> { %v438_v37 = vpop.f32.mrf.mxu0 }
  0xf2   : >> { %v488_v61 = vpop.f32.mrf.mxu1  ;;  %v486_v8 = vadd.f32 %v485_v60, %v438_v37 }
  0xf3   : >> { %v1546_v38 = vpop.f32.mrf.mxu0 }
  0xf4   : >> { %v1555_v39 = vpop.f32.mrf.mxu1 }
  0xf5   : >> { %v441_v41 = vpop.f32.mrf.mxu0 }
  0xf6   : >> { %v595_v42 = vpop.f32.mrf.mxu1 }
  0xf7   : >> { %v1547_v43 = vpop.f32.mrf.mxu0 }
  0xf8   : >> { %v1570_v44 = vpop.f32.mrf.mxu1 }
  0xf9   : >> { %v545_v59 = vpop.f32.mrf.mxu0 }
  0xfa   : >> { %v598_v45 = vpop.f32.mrf.mxu1 }
  0xfb   : >> { %v1562_v40 = vpop.f32.mrf.mxu0 }
  0xfc   : >> { %v1571_v46 = vpop.f32.mrf.mxu1 }
  0xfd   : >> { %v548_v47 = vpop.f32.mrf.mxu0 }
  0xfe   : >> { %v701_v49 = vpop.f32.mrf.mxu1 }
  0xff   : >> { %v1563_v50 = vpop.f32.mrf.mxu0 }
 0x100   : >> { %v1586_v48 = vpop.f32.mrf.mxu1 }
 0x101   : >> { %v650_v51 = vpop.f32.mrf.mxu0 }
 0x102   : >> { %v704_v53 = vpop.f32.mrf.mxu1 }
 0x103   : >> { %v1578_v56 = vpop.f32.mrf.mxu0 }
 0x104   : >> { %v1587_v54 = vpop.f32.mrf.mxu1 }
 0x105   : >> { %v653_v62 = vpop.f32.mrf.mxu0 }
 0x106   : >> { %v812_v63 = vpop.f32.mrf.mxu1 }
 0x107   : >> { %v1579_v38 = vpop.f32.mrf.mxu0 }
 0x108   : >> { %v1602_v39 = vpop.f32.mrf.mxu1 }
 0x109   : >> { %v756_v0 = vpop.f32.mrf.mxu0  ;;  %v602_v39 = vadd.f32 %v595_v42, %v486_v8  ;;  %v553_v8 = vadd.f32 %v548_v47, %v386_v16 }
 0x10a   : >> { %v815_v1 = vpop.f32.mrf.mxu1 }
 0x10b   : >> { %v1594_v43 = vpop.f32.mrf.mxu0  ;;  %v708_v12 = vadd.f32 %v701_v49, %v602_v39 }
 0x10c   : >> { %v1603_v44 = vpop.f32.mrf.mxu1  ;;  %v383_v43 = vadd.f32 %v382_v52, %v323_v55 }
 0x10d   : >> { %v759_v2 = vpop.f32.mrf.mxu0  ;;  %v489_v44 = vadd.f32 %v488_v61, %v441_v41  ;;  %v819_v15 = vadd.f32 %v812_v63, %v708_v12  ;;  %v658_v41 = vadd.f32 %v653_v62, %v553_v8  ;;  %v1272_v8 = vld [vmem:[%s1268_s26] sm:$0xf] }
 0x10e   : >> { %v917_v3 = vpop.f32.mrf.mxu1 }
 0x10f   : >> { %v1595_v40 = vpop.f32.mrf.mxu0  ;;  %v603_v14 = vadd.f32 %v598_v45, %v489_v44  ;;  %v924_v60 = vadd.f32 %v917_v3, %v819_v15  ;;  %v764_v63 = vadd.f32 %v759_v2, %v658_v41 }
 0x110   : >> { %v1618_v46 = vpop.f32.mrf.mxu1 }
 0x111   : >> { %v867_v4 = vpop.f32.mrf.mxu0  ;;  %v552_v46 = vadd.f32 %v545_v59, %v383_v43 }
 0x112   : >> { %v920_v5 = vpop.f32.mrf.mxu1 }
 0x113   : >> { %v1610_v50 = vpop.f32.mrf.mxu0 }
 0x114   : >> { %v1619_v48 = vpop.f32.mrf.mxu1 }
 0x115   : >> { %v870_v6 = vpop.f32.mrf.mxu0 }
 0x116   : >> { %v1023_v7 = vpop.f32.mrf.mxu1  ;;  %v875_v15 = vadd.f32 %v870_v6, %v764_v63 }
 0x117   : >> { %v1611_v56 = vpop.f32.mrf.mxu0  ;;  %v1030_v52 = vadd.f32 %v1023_v7, %v924_v60 }
 0x118   : >> { %v1634_v54 = vpop.f32.mrf.mxu1  ;;  %v657_v56 = vadd.f32 %v650_v51, %v552_v46 }
 0x119   : >> { %v972_v9 = vpop.f32.mrf.mxu0  ;;  %v709_v54 = vadd.f32 %v704_v53, %v603_v14 }
 0x11a   : >> { %v1026_v38 = vpop.f32.mrf.mxu1 }
 0x11b   : >> { %v1626_v10 = vpop.f32.mrf.mxu0 }
 0x11c   : >> { %v1635_v11 = vpop.f32.mrf.mxu1  ;;  %v763_v10 = vadd.f32 %v756_v0, %v657_v56 }
 0x11d   : >> { %v975_v13 = vpop.f32.mrf.mxu0  ;;  %v820_v11 = vadd.f32 %v815_v1, %v709_v54 }
 0x11e   : >> { %v1134_v40 = vpop.f32.mrf.mxu1  ;;  %v874_v42 = vadd.f32 %v867_v4, %v763_v10  ;;  %v980_v7 = vadd.f32 %v975_v13, %v875_v15 }
 0x11f   : >> { %v1627_v50 = vpop.f32.mrf.mxu0  ;;  %v925_v59 = vadd.f32 %v920_v5, %v820_v11  ;;  %v1141_v45 = vadd.f32 %v1134_v40, %v1030_v52 }
 0x120   : >> { %v1650_v48 = vpop.f32.mrf.mxu1  ;;  %v979_v39 = vadd.f32 %v972_v9, %v874_v42 }
 0x121   : >> { %v1078_v37 = vpop.f32.mrf.mxu0  ;;  %v1031_v57 = vadd.f32 %v1026_v38, %v925_v59 }
 0x122   : >> { %v1137_v17 = vpop.f32.mrf.mxu1  ;;  %v1085_v51 = vadd.f32 %v1078_v37, %v979_v39 }
 0x123   : >> { %v1642_v55 = vpop.f32.mrf.mxu0  ;;  %v1142_v16 = vadd.f32 %v1137_v17, %v1031_v57 }
 0x124   : >> { %v1651_v61 = vpop.f32.mrf.mxu1 }
 0x125   : >> { %v1081_v12 = vpop.f32.mrf.mxu0 }
 0x126   : >> { %v1239_v49 = vpop.f32.mrf.mxu1  ;;  %v1086_v43 = vadd.f32 %v1081_v12, %v980_v7 }
 0x127   : >> { %v1246_v58 = vadd.f32 %v1239_v49, %v1141_v45  ;;  %v1643_v14 = vpop.f32.mrf.mxu0 }
 0x128   : >> { %v1666_v3 = vpop.f32.mrf.mxu1 }
 0x129   : >> { %v1189_v0 = vpop.f32.mrf.mxu0  ;;  %v1252_v47 = vadd.f32 %v1938_v36, %v1246_v58 }
 0x12a   : >> { %v1242_v1 = vpop.f32.mrf.mxu1  ;;  %v1196_v53 = vadd.f32 %v1189_v0, %v1085_v51 }
 0x12b   : >> { %v1247_v4 = vadd.f32 %v1242_v1, %v1142_v16  ;;  %v1658_v5 = vpop.f32.mrf.mxu0  ;;  %v1254_v38 = vmax.f32 %v1252_v47, 0.0 }
 0x12c   : >> { %v1667_v62 = vpop.f32.mrf.mxu1  ;;  %v1248_v2 = vadd.f32 %v1938_v36, %v1196_v53 }
 0x12d   : >> { %v1192_v9 = vpop.f32.mrf.mxu0  ;;  %v1253_v6 = vadd.f32 %v1938_v36, %v1247_v4 }
 0x12e   : >> { %v1250_v44 = vmax.f32 %v1248_v2, 0.0  ;;  %v1197_v17 = vadd.f32 %v1192_v9, %v1086_v43 }
 0x12f   : >> { %v1659_v40 = vpop.f32.mrf.mxu0  ;;  %v1255_v50 = vmax.f32 %v1253_v6, 0.0 }
 0x130   : >> { %v1256_v13 = vmax.f32 %v1250_v44, %v1254_v38  ;;  %v1249_v46 = vadd.f32 %v1938_v36, %v1197_v17 }
 0x132   : >> { %1259 = vst.msk [vmem:[#allocation2] sm:$0xff] %vm1258_vm2, %v1256_v13  ;;  %v1251_v48 = vmax.f32 %v1249_v46, 0.0 }
 0x134   : >> { %v1257_v56 = vmax.f32 %v1251_v48, %v1255_v50 }
 0x136   : >> { %1261 = vst.msk [vmem:[#allocation2 + $0x8] sm:$0x3f] %vm1260_vm3, %v1257_v56 }
 0x13d   : >> { %v1262_v54 = vld [vmem:[#allocation2] ss:$2 sm:$0x7f]  ;;  %v1264_v60 = vld [vmem:[#allocation2 + $0x1] ss:$2 sm:$0x7f] }
 0x13e   : >> { %v1265_v37 = vmax.f32 %v1262_v54, %v1264_v60 }
 0x13f   : > { %227 = sbr.rel (!%p225_p4) target bundleno = 28 (0x1c), region = 83 }
 0x140   : >> { %v1266_v10 = vpack.c.bf16 %v1265_v37, %v1265_v37 }
 0x142   : >> { %v1273_v11 = vsel %vm1271_vm6, %v1266_v10, %v1272_v8 }
 0x143   : >> { %1274 = vst [vmem:[%s1268_s26] sm:$0xf] %v1273_v11 }
 0x144 PF: > { %s13_s12 = sadd.s32 1, %s1709_s12  }
 0x145   : > { %p10_p5 = scmp.ge.s32.totalorder %s13_s12, 4  }
 0x147   :  { %12 = sbr.rel (!%p10_p5) target bundleno = 1 (0x1), region = 94 }

// kernel: cnn_forward.5
= control target key start
LH: loop header
LB: loop body
LE: loop exit
PB: predicated region body
PF: predicated region fallthrough
CT: control target
= control target key end

     0   :  { %v427_v27 = vlaneseq  ;;  %v3028_v35 = vmov 1966171168   ;;  %s3694_s0 = inlined_call_operand.vmem [shape: bf16[2,3136], index: 0, kind: input, shape index: {}]   ;;  %s3695_s1 = inlined_call_operand.vmem [shape: bf16[3136,128], index: 1, kind: input, shape index: {}]   ;;  %s3696_s2 = inlined_call_operand.vmem [shape: f32[1,128], index: 2, kind: input, shape index: {}]   ;;  %s3697_s3 = inlined_call_operand.hbm [shape: f32[2,128], index: 3, kind: output, shape index: {}]  }
   0x1   :  { %v2807_v0 = vld [vmem:[%s3695_s1 + $0x78] sm:$0xff]   ;;  %v2811_v4 = vld [vmem:[%s3695_s1 + $0x70] sm:$0xff]   ;;  %v2815_v8 = vld [vmem:[%s3695_s1 + $0x68] sm:$0xff]   ;;  %v425_v36 = vunpack.c.l.s4 %v3028_v35 }
   0x2   :  { %v2808_v1 = vld [vmem:[%s3695_s1 + $0x38] sm:$0xff]   ;;  %2522 = vmatprep.subr.bf16.mxu0 %v2807_v0  ;;  %v2812_v5 = vld [vmem:[%s3695_s1 + $0x30] sm:$0xff]   ;;  %v2816_v9 = vld [vmem:[%s3695_s1 + $0x28] sm:$0xff]   ;;  %v428_v32 = vshrl.u32 %v427_v27, 7 }
   0x3   :  { %v2809_v2 = vld [vmem:[%s3695_s1 + $0xf8] sm:$0xff]   ;;  %2523 = vmatpush3.bf16.msra.mxu0 %v2808_v1  ;;  %v2813_v6 = vld [vmem:[%s3695_s1 + $0xf0] sm:$0xff]   ;;  %v2817_v10 = vld [vmem:[%s3695_s1 + $0xe8] sm:$0xff]   ;;  %v426_v39 = vunpack.c.0.s8 %v425_v36 }
   0x4   :  { %v2810_v3 = vld [vmem:[%s3695_s1 + $0xb8] sm:$0xff]   ;;  %2544 = vmatprep.subr.bf16.mxu1 %v2809_v2  ;;  %2524 = vmatprep.subr.bf16.mxu0 %v2811_v4  ;;  %v2814_v7 = vld [vmem:[%s3695_s1 + $0xb0] sm:$0xff]   ;;  %v2818_v11 = vld [vmem:[%s3695_s1 + $0xa8] sm:$0xff]  }
   0x5   :  { %2545 = vmatpush3.bf16.msra.mxu1 %v2810_v3  ;;  %v2819_v12 = vld [vmem:[%s3695_s1 + $0x60] sm:$0xff]   ;;  %v2823_v16 = vld [vmem:[%s3695_s1 + $0x58] sm:$0xff]   ;;  %v2827_v20 = vld [vmem:[%s3695_s1 + $0x50] sm:$0xff]   ;;  %v3157_v41 = vsub.s32 %v426_v39, %v428_v32 }
   0x6   :  { %2546 = vmatprep.subr.bf16.mxu1 %v2813_v6  ;;  %v2820_v13 = vld [vmem:[%s3695_s1 + $0x20] sm:$0xff]   ;;  %v2824_v17 = vld [vmem:[%s3695_s1 + $0x18] sm:$0xff]   ;;  %v2828_v21 = vld [vmem:[%s3695_s1 + $0x10] sm:$0xff]  }
   0x7   :  { %2525 = vmatpush3.bf16.msra.mxu0 %v2812_v5  ;;  %v2821_v14 = vld [vmem:[%s3695_s1 + $0xe0] sm:$0xff]   ;;  %v2825_v18 = vld [vmem:[%s3695_s1 + $0xd8] sm:$0xff]   ;;  %v2829_v22 = vld [vmem:[%s3695_s1 + $0xd0] sm:$0xff]  }
   0x8   :  { %2526 = vmatprep.subr.bf16.mxu0 %v2815_v8  ;;  %v2822_v15 = vld [vmem:[%s3695_s1 + $0xa0] sm:$0xff]   ;;  %v2826_v19 = vld [vmem:[%s3695_s1 + $0x98] sm:$0xff]   ;;  %v2830_v23 = vld [vmem:[%s3695_s1 + $0x90] sm:$0xff]  }
   0x9   :  { %2547 = vmatpush3.bf16.msra.mxu1 %v2814_v7  ;;  %v2831_v24 = vld [vmem:[%s3695_s1 + $0x48] sm:$0xff]   ;;  %v2835_v29 = vld [vmem:[%s3695_s1 + $0x40] sm:$0xff]   ;;  %v2840_v37 = vld [vmem:[%s3695_s1 + $0x178] sm:$0xff]  }
   0xa   :  { %2548 = vmatprep.subr.bf16.mxu1 %v2817_v10  ;;  %v2832_v25 = vld [vmem:[%s3695_s1 + $0x8] sm:$0xff]   ;;  %v2836_v30 = vld [vmem:[%s3695_s1] sm:$0xff]   ;;  %v2842_v40 = vld [vmem:[%s3695_s1 + $0x1f8] sm:$0xff]  }
   0xb   :  { %2527 = vmatpush3.bf16.msra.mxu0 %v2816_v9  ;;  %v2833_v26 = vld [vmem:[%s3695_s1 + $0xc8] sm:$0xff]   ;;  %v2837_v31 = vld [vmem:[%s3695_s1 + $0xc0] sm:$0xff]   ;;  %v2841_v48 = vld [vmem:[%s3695_s1 + $0x138] sm:$0xff]  }
   0xc   :  { %2528 = vmatprep.subr.bf16.mxu0 %v2819_v12  ;;  %v2834_v28 = vld [vmem:[%s3695_s1 + $0x88] sm:$0xff]   ;;  %v16_v33 = vld [vmem:[%s3694_s0] sm:$0xff]  ;;  %v2844_v51 = vld [vmem:[%s3695_s1 + $0x170] sm:$0xff]  }
   0xd   :  { %2549 = vmatpush3.bf16.msra.mxu1 %v2818_v11  ;;  %v2839_v34 = vld [vmem:[%s3695_s1 + $0x80] sm:$0xff]   ;;  %v423_v38 = vcombine.high %v16_v33, %v16_v33  ;;  %v430_v42 = vrot.slane %v16_v33, %v3157_v41  ;;  %v2843_v53 = vld [vmem:[%s3695_s1 + $0x1b8] sm:$0xff]   ;;  %v2846_v54 = vld [vmem:[%s3695_s1 + $0x1f0] sm:$0xff]  }
   0xe   :  { %2550 = vmatprep.subr.bf16.mxu1 %v2821_v14  ;;  %v2845_v56 = vld [vmem:[%s3695_s1 + $0x130] sm:$0xff]   ;;  %v2848_v57 = vld [vmem:[%s3695_s1 + $0x168] sm:$0xff]   ;;  %v2852_v61 = vld [vmem:[%s3695_s1 + $0x160] sm:$0xff]  }
   0xf   :  { %2529 = vmatpush3.bf16.msra.mxu0 %v2820_v13  ;;  %v3161_v43 = vrot.slane %v423_v38, %v3157_v41  ;;  %v438_v44 = vcombine.high %v430_v42, %v430_v42  ;;  %v446_v45 = vrot.slane %v430_v42, %v3157_v41  ;;  %v2847_v58 = vld [vmem:[%s3695_s1 + $0x1b0] sm:$0xff]   ;;  %v2850_v59 = vld [vmem:[%s3695_s1 + $0x1e8] sm:$0xff]   ;;  %v2854_v63 = vld [vmem:[%s3695_s1 + $0x1e0] sm:$0xff]  }
  0x10   :  { %2530 = vmatprep.subr.bf16.mxu0 %v2823_v16  ;;  %v2849_v60 = vld [vmem:[%s3695_s1 + $0x128] sm:$0xff]   ;;  %v2853_v0 = vld [vmem:[%s3695_s1 + $0x120] sm:$0xff]   ;;  %v2856_v1 = vld [vmem:[%s3695_s1 + $0x158] sm:$0xff]  }
  0x11   :  { %2551 = vmatpush3.bf16.msra.mxu1 %v2822_v15  ;;  %v439_v46 = vcombine.high %v3161_v43, %v3161_v43  ;;  %v460_v47 = vrot.slane %v438_v44, %v3157_v41  ;;  %v468_v50 = vcombine.high %v446_v45, %v446_v45  ;;  %v2851_v62 = vld [vmem:[%s3695_s1 + $0x1a8] sm:$0xff]   ;;  %v2855_v2 = vld [vmem:[%s3695_s1 + $0x1a0] sm:$0xff]   ;;  %v2858_v3 = vld [vmem:[%s3695_s1 + $0x1d8] sm:$0xff]  }
  0x12   :  { %2552 = vmatprep.subr.bf16.mxu1 %v2825_v18  ;;  %v2857_v4 = vld [vmem:[%s3695_s1 + $0x118] sm:$0xff]   ;;  %v2860_v5 = vld [vmem:[%s3695_s1 + $0x150] sm:$0xff]   ;;  %v2864_v9 = vld [vmem:[%s3695_s1 + $0x148] sm:$0xff]  }
  0x13   :  { %2531 = vmatpush3.bf16.msra.mxu0 %v2824_v17  ;;  %v467_v49 = vrot.slane %v439_v46, %v3157_v41  ;;  %1820 = vmatprep.mubr.bf16.mxu0 %v460_v47  ;;  %v470_v52 = vcombine.high %v460_v47, %v460_v47  ;;  %v2859_v6 = vld [vmem:[%s3695_s1 + $0x198] sm:$0xff]   ;;  %v2862_v7 = vld [vmem:[%s3695_s1 + $0x1d0] sm:$0xff]   ;;  %v2866_v11 = vld [vmem:[%s3695_s1 + $0x1c8] sm:$0xff]   ;;  %v453_v17 = vrot.slane %v3161_v43, %v3157_v41 }
  0x14   :  { %2532 = vmatprep.subr.bf16.mxu0 %v2827_v20  ;;  %v2861_v8 = vld [vmem:[%s3695_s1 + $0x110] sm:$0xff]   ;;  %v2865_v12 = vld [vmem:[%s3695_s1 + $0x108] sm:$0xff]   ;;  %v2868_v13 = vld [vmem:[%s3695_s1 + $0x140] sm:$0xff]  }
  0x15   :  { %2553 = vmatpush3.bf16.msra.mxu1 %v2826_v19  ;;  %v471_v55 = vcombine.high %v467_v49, %v467_v49  ;;  %1860 = vmatprep.mubr.bf16.mxu1 %v470_v52  ;;  %v2863_v10 = vld [vmem:[%s3695_s1 + $0x190] sm:$0xff]   ;;  %v2867_v14 = vld [vmem:[%s3695_s1 + $0x188] sm:$0xff]   ;;  %v2870_v15 = vld [vmem:[%s3695_s1 + $0x1c0] sm:$0xff]  }
  0x16   :  { %2554 = vmatprep.subr.bf16.mxu1 %v2829_v22  ;;  %v2869_v16 = vld [vmem:[%s3695_s1 + $0x100] sm:$0xff]   ;;  %v2872_v18 = vld [vmem:[%s3695_s1 + $0x278] sm:$0xff]   ;;  %v469_v22 = vcombine.high %v453_v17, %v453_v17  ;;  %v2880_v27 = vld [vmem:[%s3695_s1 + $0x268] sm:$0xff]  }
  0x17   :  { %2533 = vmatpush3.bf16.msra.mxu0 %v2828_v21  ;;  %v2871_v19 = vld [vmem:[%s3695_s1 + $0x180] sm:$0xff]   ;;  %v2874_v20 = vld [vmem:[%s3695_s1 + $0x2f8] sm:$0xff]   ;;  %v2883_v32 = vld [vmem:[%s3695_s1 + $0x2a8] sm:$0xff]  }
  0x18   :  { %2534 = vmatprep.subr.bf16.mxu0 %v2831_v24  ;;  %v2873_v21 = vld [vmem:[%s3695_s1 + $0x238] sm:$0xff]   ;;  %v2886_v33 = vld [vmem:[%s3695_s1 + $0x2e0] sm:$0xff]   ;;  %v2892_v39 = vld [vmem:[%s3695_s1 + $0x250] sm:$0xff]  }
  0x19   :  { %2555 = vmatpush3.bf16.msra.mxu1 %v2830_v23  ;;  %v2876_v23 = vld [vmem:[%s3695_s1 + $0x270] sm:$0xff]   ;;  %v2875_v24 = vld [vmem:[%s3695_s1 + $0x2b8] sm:$0xff]   ;;  %v2887_v36 = vld [vmem:[%s3695_s1 + $0x2a0] sm:$0xff]  }
  0x1a   :  { %2556 = vmatprep.subr.bf16.mxu1 %v2833_v26  ;;  %v2877_v26 = vld [vmem:[%s3695_s1 + $0x230] sm:$0xff]   ;;  %v2888_v35 = vld [vmem:[%s3695_s1 + $0x258] sm:$0xff]   ;;  %v2896_v44 = vld [vmem:[%s3695_s1 + $0x248] sm:$0xff]  }
  0x1b   :  { %2535 = vmatpush3.bf16.msra.mxu0 %v2832_v25  ;;  %v2878_v25 = vld [vmem:[%s3695_s1 + $0x2f0] sm:$0xff]   ;;  %v2889_v38 = vld [vmem:[%s3695_s1 + $0x218] sm:$0xff]  }
  0x1c   :  { %2536 = vmatprep.subr.bf16.mxu0 %v2835_v29  ;;  %v2882_v29 = vld [vmem:[%s3695_s1 + $0x2e8] sm:$0xff]   ;;  %v2894_v42 = vld [vmem:[%s3695_s1 + $0x2d0] sm:$0xff]  }
  0x1d   :  { %2557 = vmatpush3.bf16.msra.mxu1 %v2834_v28  ;;  %v2879_v28 = vld [vmem:[%s3695_s1 + $0x2b0] sm:$0xff]  }
  0x1e   :  { %2558 = vmatprep.subr.bf16.mxu1 %v2837_v31  ;;  %v2884_v31 = vld [vmem:[%s3695_s1 + $0x260] sm:$0xff]   ;;  %v2893_v43 = vld [vmem:[%s3695_s1 + $0x210] sm:$0xff]  }
  0x1f   :  { %2537 = vmatpush3.bf16.msra.mxu0 %v2836_v30  ;;  %v2881_v30 = vld [vmem:[%s3695_s1 + $0x228] sm:$0xff]   ;;  %v2895_v46 = vld [vmem:[%s3695_s1 + $0x290] sm:$0xff]  }
  0x20   :  { %2566 = vmatprep.subr.bf16.mxu0 %v2840_v37  ;;  %v2890_v37 = vld [vmem:[%s3695_s1 + $0x2d8] sm:$0xff]  }
  0x21   :  { %2559 = vmatpush3.bf16.msra.mxu1 %v2839_v34  ;;  %v2885_v34 = vld [vmem:[%s3695_s1 + $0x220] sm:$0xff]  }
  0x22   :  { %2588 = vmatprep.subr.bf16.mxu1 %v2842_v40  ;;  %1821 = vmatmul.mubr.bf16.vlgmr.msra.gmra.mxu0 %v446_v45  ;;  %v2891_v40 = vld [vmem:[%s3695_s1 + $0x298] sm:$0xff]   ;;  %v17_v45 = vld [vmem:[%s3694_s0 + $0x8] sm:$0xff] }
  0x23   :  { %2567 = vmatpush3.bf16.msra.mxu0 %v2841_v48  ;;  %1900 = vmatprep.mubr.bf16.mxu0 %v467_v49  ;;  %v479_v47 = vrot.slane %v17_v45, %v3157_v41  ;;  %v472_v48 = vcombine.high %v17_v45, %v17_v45  ;;  %v2898_v49 = vld [vmem:[%s3695_s1 + $0x2c8] sm:$0xff]  }
  0x24   :  { %1861 = vmatmul.mubr.bf16.vlgmr.msra.gmra.mxu1 %v468_v50  ;;  %2568 = vmatprep.subr.bf16.mxu0 %v2844_v51  ;;  %v2897_v50 = vld [vmem:[%s3695_s1 + $0x208] sm:$0xff]  }
  0x25   :  { %2589 = vmatpush3.bf16.msra.mxu1 %v2843_v53  ;;  %1940 = vmatprep.mubr.bf16.mxu1 %v471_v55  ;;  %v487_v51 = vcombine.high %v479_v47, %v479_v47  ;;  %v3346_v52 = vrot.slane %v472_v48, %v3157_v41  ;;  %v2900_v53 = vld [vmem:[%s3695_s1 + $0x240] sm:$0xff]   ;;  %v2947_v45 = vld [vmem:[%s3695_s1 + $0x4e8] sm:$0xff]  }
  0x26   :  { %2590 = vmatprep.subr.bf16.mxu1 %v2846_v54  ;;  %v2899_v54 = vld [vmem:[%s3695_s1 + $0x288] sm:$0xff]  }
  0x27   :  { %2569 = vmatpush3.bf16.msra.mxu0 %v2845_v56  ;;  %v509_v55 = vrot.slane %v487_v51, %v3157_v41  ;;  %v488_v56 = vcombine.high %v3346_v52, %v3346_v52  ;;  %v2948_v48 = vld [vmem:[%s3695_s1 + $0x4a8] sm:$0xff]   ;;  %v2953_v51 = vld [vmem:[%s3695_s1 + $0x458] sm:$0xff]  }
  0x28   :  { %2570 = vmatprep.subr.bf16.mxu0 %v2848_v57  ;;  %v2902_v57 = vld [vmem:[%s3695_s1 + $0x2c0] sm:$0xff]  }
  0x29   :  { %2591 = vmatpush3.bf16.msra.mxu1 %v2847_v58  ;;  %v2901_v58 = vld [vmem:[%s3695_s1 + $0x200] sm:$0xff]  }
  0x2a   :  { %2592 = vmatprep.subr.bf16.mxu1 %v2850_v59  ;;  %v519_v59 = vcombine.high %v509_v55, %v509_v55 }
  0x2b   :  { %2571 = vmatpush3.bf16.msra.mxu0 %v2849_v60  ;;  %v495_v60 = vrot.slane %v479_v47, %v3157_v41  ;;  %v2949_v47 = vld [vmem:[%s3695_s1 + $0x460] sm:$0xff]  }
  0x2c   :  { %2572 = vmatprep.subr.bf16.mxu0 %v2852_v61  ;;  %v2904_v61 = vld [vmem:[%s3695_s1 + $0x378] sm:$0xff]  }
  0x2d   :  { %2593 = vmatpush3.bf16.msra.mxu1 %v2851_v62  ;;  %v2903_v62 = vld [vmem:[%s3695_s1 + $0x280] sm:$0xff]  }
  0x2e   :  { %2594 = vmatprep.subr.bf16.mxu1 %v2854_v63  ;;  %v516_v63 = vrot.slane %v488_v56, %v3157_v41  ;;  %v2956_v56 = vld [vmem:[%s3695_s1 + $0x498] sm:$0xff]  }
  0x2f   :  { %2573 = vmatpush3.bf16.msra.mxu0 %v2853_v0  ;;  %v2906_v0 = vld [vmem:[%s3695_s1 + $0x3f8] sm:$0xff]  }
  0x30   :  { %2574 = vmatprep.subr.bf16.mxu0 %v2856_v1  ;;  %v2905_v1 = vld [vmem:[%s3695_s1 + $0x338] sm:$0xff]  }
  0x31   :  { %2595 = vmatpush3.bf16.msra.mxu1 %v2855_v2  ;;  %v517_v2 = vcombine.high %v495_v60, %v495_v60 }
  0x32   :  { %2596 = vmatprep.subr.bf16.mxu1 %v2858_v3  ;;  %v2908_v3 = vld [vmem:[%s3695_s1 + $0x370] sm:$0xff]  }
  0x33   :  { %2575 = vmatpush3.bf16.msra.mxu0 %v2857_v4  ;;  %v2907_v4 = vld [vmem:[%s3695_s1 + $0x3b8] sm:$0xff]  }
  0x34   :  { %2576 = vmatprep.subr.bf16.mxu0 %v2860_v5  ;;  %v520_v5 = vcombine.high %v516_v63, %v516_v63 }
  0x35   :  { %2597 = vmatpush3.bf16.msra.mxu1 %v2859_v6  ;;  %v2910_v6 = vld [vmem:[%s3695_s1 + $0x3f0] sm:$0xff]  }
  0x36   :  { %2598 = vmatprep.subr.bf16.mxu1 %v2862_v7  ;;  %v2909_v7 = vld [vmem:[%s3695_s1 + $0x330] sm:$0xff]  }
  0x37   :  { %2577 = vmatpush3.bf16.msra.mxu0 %v2861_v8  ;;  %v2912_v8 = vld [vmem:[%s3695_s1 + $0x368] sm:$0xff]  }
  0x38   :  { %2578 = vmatprep.subr.bf16.mxu0 %v2864_v9  ;;  %v2911_v9 = vld [vmem:[%s3695_s1 + $0x3b0] sm:$0xff]  }
  0x39   :  { %2599 = vmatpush3.bf16.msra.mxu1 %v2863_v10  ;;  %v2914_v10 = vld [vmem:[%s3695_s1 + $0x3e8] sm:$0xff]  }
  0x3a   :  { %2600 = vmatprep.subr.bf16.mxu1 %v2866_v11  ;;  %v2913_v11 = vld [vmem:[%s3695_s1 + $0x328] sm:$0xff]  }
  0x3b   :  { %2579 = vmatpush3.bf16.msra.mxu0 %v2865_v12  ;;  %v2916_v12 = vld [vmem:[%s3695_s1 + $0x360] sm:$0xff]  }
  0x3c   :  { %2580 = vmatprep.subr.bf16.mxu0 %v2868_v13  ;;  %v2915_v13 = vld [vmem:[%s3695_s1 + $0x3a8] sm:$0xff]  }
  0x3d   :  { %2601 = vmatpush3.bf16.msra.mxu1 %v2867_v14  ;;  %v2918_v14 = vld [vmem:[%s3695_s1 + $0x3e0] sm:$0xff]  }
  0x3e   :  { %2602 = vmatprep.subr.bf16.mxu1 %v2870_v15  ;;  %v2917_v15 = vld [vmem:[%s3695_s1 + $0x320] sm:$0xff]  }
  0x3f   :  { %2581 = vmatpush3.bf16.msra.mxu0 %v2869_v16  ;;  %v2920_v16 = vld [vmem:[%s3695_s1 + $0x358] sm:$0xff]  }
  0x40   :  { %2610 = vmatprep.subr.bf16.mxu0 %v2872_v18  ;;  %v2922_v18 = vld [vmem:[%s3695_s1 + $0x3d8] sm:$0xff]  }
  0x41   :  { %2603 = vmatpush3.bf16.msra.mxu1 %v2871_v19  ;;  %v2921_v19 = vld [vmem:[%s3695_s1 + $0x318] sm:$0xff]  }
  0x42   :  { %1901 = vmatmul.mubr.bf16.vlgmr.msra.gmra.mxu0 %v453_v17  ;;  %2632 = vmatprep.subr.bf16.mxu1 %v2874_v20  ;;  %v2919_v17 = vld [vmem:[%s3695_s1 + $0x3a0] sm:$0xff]   ;;  %v2924_v20 = vld [vmem:[%s3695_s1 + $0x350] sm:$0xff]  }
  0x43   :  { %2611 = vmatpush3.bf16.msra.mxu0 %v2873_v21  ;;  %1980 = vmatprep.mubr.bf16.mxu0 %v509_v55  ;;  %v2923_v21 = vld [vmem:[%s3695_s1 + $0x398] sm:$0xff]   ;;  %v2957_v55 = vld [vmem:[%s3695_s1 + $0x450] sm:$0xff]  }
  0x44   :  { %1941 = vmatmul.mubr.bf16.vlgmr.msra.gmra.mxu1 %v469_v22  ;;  %2612 = vmatprep.subr.bf16.mxu0 %v2876_v23  ;;  %v2926_v22 = vld [vmem:[%s3695_s1 + $0x3d0] sm:$0xff]  }
  0x45   :  { %2633 = vmatpush3.bf16.msra.mxu1 %v2875_v24  ;;  %2020 = vmatprep.mubr.bf16.mxu1 %v519_v59  ;;  %v2925_v23 = vld [vmem:[%s3695_s1 + $0x310] sm:$0xff]   ;;  %v2928_v24 = vld [vmem:[%s3695_s1 + $0x348] sm:$0xff]  }
  0x46   :  { %2634 = vmatprep.subr.bf16.mxu1 %v2878_v25  ;;  %v2927_v25 = vld [vmem:[%s3695_s1 + $0x390] sm:$0xff]   ;;  %v2961_v59 = vld [vmem:[%s3695_s1 + $0x448] sm:$0xff]  }
  0x47   :  { %2613 = vmatpush3.bf16.msra.mxu0 %v2877_v26  ;;  %v2930_v26 = vld [vmem:[%s3695_s1 + $0x3c8] sm:$0xff]  }
  0x48   :  { %2614 = vmatprep.subr.bf16.mxu0 %v2880_v27  ;;  %v2929_v27 = vld [vmem:[%s3695_s1 + $0x308] sm:$0xff]  }
  0x49   :  { %2635 = vmatpush3.bf16.msra.mxu1 %v2879_v28  ;;  %v2932_v28 = vld [vmem:[%s3695_s1 + $0x340] sm:$0xff]  }
  0x4a   :  { %2636 = vmatprep.subr.bf16.mxu1 %v2882_v29  ;;  %v2931_v29 = vld [vmem:[%s3695_s1 + $0x388] sm:$0xff]  }
  0x4b   :  { %2615 = vmatpush3.bf16.msra.mxu0 %v2881_v30  ;;  %v2934_v30 = vld [vmem:[%s3695_s1 + $0x3c0] sm:$0xff]  }
  0x4c   :  { %2616 = vmatprep.subr.bf16.mxu0 %v2884_v31  ;;  %v2933_v31 = vld [vmem:[%s3695_s1 + $0x300] sm:$0xff]  }
  0x4d   :  { %2637 = vmatpush3.bf16.msra.mxu1 %v2883_v32  ;;  %v502_v32 = vrot.slane %v3346_v52, %v3157_v41  ;;  %v2952_v52 = vld [vmem:[%s3695_s1 + $0x4a0] sm:$0xff]  }
  0x4e   :  { %2638 = vmatprep.subr.bf16.mxu1 %v2886_v33  ;;  %v2937_v33 = vld [vmem:[%s3695_s1 + $0x478] sm:$0xff]  }
  0x4f   :  { %2617 = vmatpush3.bf16.msra.mxu0 %v2885_v34  ;;  %v2936_v34 = vld [vmem:[%s3695_s1 + $0x380] sm:$0xff]  }
  0x50   :  { %2618 = vmatprep.subr.bf16.mxu0 %v2888_v35  ;;  %v2939_v35 = vld [vmem:[%s3695_s1 + $0x4f8] sm:$0xff]  }
  0x51   :  { %2639 = vmatpush3.bf16.msra.mxu1 %v2887_v36  ;;  %v2938_v36 = vld [vmem:[%s3695_s1 + $0x438] sm:$0xff]  }
  0x52   :  { %2640 = vmatprep.subr.bf16.mxu1 %v2890_v37  ;;  %v518_v37 = vcombine.high %v502_v32, %v502_v32 }
  0x53   :  { %2619 = vmatpush3.bf16.msra.mxu0 %v2889_v38  ;;  %v2941_v38 = vld [vmem:[%s3695_s1 + $0x470] sm:$0xff]  }
  0x54   :  { %2620 = vmatprep.subr.bf16.mxu0 %v2892_v39  ;;  %v2940_v39 = vld [vmem:[%s3695_s1 + $0x4b8] sm:$0xff]  }
  0x55   :  { %2641 = vmatpush3.bf16.msra.mxu1 %v2891_v40  ;;  %v2943_v40 = vld [vmem:[%s3695_s1 + $0x4f0] sm:$0xff]  }
  0x56   :  { %2642 = vmatprep.subr.bf16.mxu1 %v2894_v42  ;;  %v2942_v42 = vld [vmem:[%s3695_s1 + $0x430] sm:$0xff]  }
  0x57   :  { %2621 = vmatpush3.bf16.msra.mxu0 %v2893_v43  ;;  %v2945_v43 = vld [vmem:[%s3695_s1 + $0x468] sm:$0xff]  }
  0x58   :  { %2622 = vmatprep.subr.bf16.mxu0 %v2896_v44  ;;  %v2944_v44 = vld [vmem:[%s3695_s1 + $0x4b0] sm:$0xff]  }
  0x59   :  { %2643 = vmatpush3.bf16.msra.mxu1 %v2895_v46  ;;  %v2946_v46 = vld [vmem:[%s3695_s1 + $0x428] sm:$0xff]  }
  0x5a   :  { %2644 = vmatprep.subr.bf16.mxu1 %v2898_v49  ;;  %v2951_v49 = vld [vmem:[%s3695_s1 + $0x4e0] sm:$0xff]  }
  0x5b   :  { %2623 = vmatpush3.bf16.msra.mxu0 %v2897_v50  ;;  %v2950_v50 = vld [vmem:[%s3695_s1 + $0x420] sm:$0xff]  }
  0x5c   :  { %2624 = vmatprep.subr.bf16.mxu0 %v2900_v53  ;;  %v2955_v53 = vld [vmem:[%s3695_s1 + $0x4d8] sm:$0xff]  }
  0x5d   :  { %2645 = vmatpush3.bf16.msra.mxu1 %v2899_v54  ;;  %v2954_v54 = vld [vmem:[%s3695_s1 + $0x418] sm:$0xff]  }
  0x5e   :  { %2646 = vmatprep.subr.bf16.mxu1 %v2902_v57  ;;  %v2959_v57 = vld [vmem:[%s3695_s1 + $0x4d0] sm:$0xff]  }
  0x5f   :  { %2625 = vmatpush3.bf16.msra.mxu0 %v2901_v58  ;;  %v2958_v58 = vld [vmem:[%s3695_s1 + $0x410] sm:$0xff]  }
  0x60   :  { %2654 = vmatprep.subr.bf16.mxu0 %v2904_v61  ;;  %v2960_v61 = vld [vmem:[%s3695_s1 + $0x490] sm:$0xff]  }
  0x61   :  { %2647 = vmatpush3.bf16.msra.mxu1 %v2903_v62 }
  0x62   :  { %1981 = vmatmul.mubr.bf16.vlgmr.msra.gmra.mxu0 %v495_v60  ;;  %2676 = vmatprep.subr.bf16.mxu1 %v2906_v0  ;;  %v18_v60 = vld [vmem:[%s3694_s0 + $0x10] sm:$0xff]  ;;  %v2963_v0 = vld [vmem:[%s3695_s1 + $0x4c8] sm:$0xff]  }
  0x63   :  { %2655 = vmatpush3.bf16.msra.mxu0 %v2905_v1  ;;  %2060 = vmatprep.mubr.bf16.mxu0 %v516_v63  ;;  %v528_v62 = vrot.slane %v18_v60, %v3157_v41  ;;  %v521_v63 = vcombine.high %v18_v60, %v18_v60  ;;  %v2962_v1 = vld [vmem:[%s3695_s1 + $0x408] sm:$0xff]  }
  0x64   :  { %2021 = vmatmul.mubr.bf16.vlgmr.msra.gmra.mxu1 %v517_v2  ;;  %2656 = vmatprep.subr.bf16.mxu0 %v2908_v3 }
  0x65   :  { %2677 = vmatpush3.bf16.msra.mxu1 %v2907_v4  ;;  %2100 = vmatprep.mubr.bf16.mxu1 %v520_v5  ;;  %v536_v2 = vcombine.high %v528_v62, %v528_v62  ;;  %v3552_v3 = vrot.slane %v521_v63, %v3157_v41  ;;  %v2965_v4 = vld [vmem:[%s3695_s1 + $0x440] sm:$0xff]   ;;  %v2964_v5 = vld [vmem:[%s3695_s1 + $0x488] sm:$0xff]  }
  0x66   :  { %2678 = vmatprep.subr.bf16.mxu1 %v2910_v6 }
  0x67   :  { %2657 = vmatpush3.bf16.msra.mxu0 %v2909_v7  ;;  %v558_v6 = vrot.slane %v536_v2, %v3157_v41  ;;  %v537_v7 = vcombine.high %v3552_v3, %v3552_v3 }
  0x68   :  { %2658 = vmatprep.subr.bf16.mxu0 %v2912_v8  ;;  %v2967_v8 = vld [vmem:[%s3695_s1 + $0x4c0] sm:$0xff]  }
  0x69   :  { %2679 = vmatpush3.bf16.msra.mxu1 %v2911_v9  ;;  %v2966_v9 = vld [vmem:[%s3695_s1 + $0x400] sm:$0xff]  }
  0x6a   :  { %2680 = vmatprep.subr.bf16.mxu1 %v2914_v10  ;;  %v568_v10 = vcombine.high %v558_v6, %v558_v6 }
  0x6b   :  { %2659 = vmatpush3.bf16.msra.mxu0 %v2913_v11  ;;  %v544_v11 = vrot.slane %v528_v62, %v3157_v41 }
  0x6c   :  { %2660 = vmatprep.subr.bf16.mxu0 %v2916_v12  ;;  %v2969_v12 = vld [vmem:[%s3695_s1 + $0x578] sm:$0xff]  }
  0x6d   :  { %2681 = vmatpush3.bf16.msra.mxu1 %v2915_v13  ;;  %v2968_v13 = vld [vmem:[%s3695_s1 + $0x480] sm:$0xff]  }
  0x6e   :  { %2682 = vmatprep.subr.bf16.mxu1 %v2918_v14  ;;  %v565_v14 = vrot.slane %v537_v7, %v3157_v41 }
  0x6f   :  { %2661 = vmatpush3.bf16.msra.mxu0 %v2917_v15  ;;  %v2971_v15 = vld [vmem:[%s3695_s1 + $0x5f8] sm:$0xff]  }
  0x70   :  { %2662 = vmatprep.subr.bf16.mxu0 %v2920_v16  ;;  %v2970_v16 = vld [vmem:[%s3695_s1 + $0x538] sm:$0xff]  }
  0x71   :  { %2683 = vmatpush3.bf16.msra.mxu1 %v2919_v17  ;;  %v566_v17 = vcombine.high %v544_v11, %v544_v11 }
  0x72   :  { %2684 = vmatprep.subr.bf16.mxu1 %v2922_v18  ;;  %v2973_v18 = vld [vmem:[%s3695_s1 + $0x570] sm:$0xff]  }
  0x73   :  { %2663 = vmatpush3.bf16.msra.mxu0 %v2921_v19  ;;  %v2972_v19 = vld [vmem:[%s3695_s1 + $0x5b8] sm:$0xff]  }
  0x74   :  { %2664 = vmatprep.subr.bf16.mxu0 %v2924_v20  ;;  %v569_v20 = vcombine.high %v565_v14, %v565_v14 }
  0x75   :  { %2685 = vmatpush3.bf16.msra.mxu1 %v2923_v21  ;;  %v2975_v21 = vld [vmem:[%s3695_s1 + $0x5f0] sm:$0xff]  }
  0x76   :  { %2686 = vmatprep.subr.bf16.mxu1 %v2926_v22  ;;  %v2974_v22 = vld [vmem:[%s3695_s1 + $0x530] sm:$0xff]  }
  0x77   :  { %2665 = vmatpush3.bf16.msra.mxu0 %v2925_v23  ;;  %v2977_v23 = vld [vmem:[%s3695_s1 + $0x568] sm:$0xff]  }
  0x78   :  { %2666 = vmatprep.subr.bf16.mxu0 %v2928_v24  ;;  %v2976_v24 = vld [vmem:[%s3695_s1 + $0x5b0] sm:$0xff]  }
  0x79   :  { %2687 = vmatpush3.bf16.msra.mxu1 %v2927_v25  ;;  %v2979_v25 = vld [vmem:[%s3695_s1 + $0x5e8] sm:$0xff]  }
  0x7a   :  { %2688 = vmatprep.subr.bf16.mxu1 %v2930_v26  ;;  %v2978_v26 = vld [vmem:[%s3695_s1 + $0x528] sm:$0xff]  }
  0x7b   :  { %2667 = vmatpush3.bf16.msra.mxu0 %v2929_v27  ;;  %v2981_v27 = vld [vmem:[%s3695_s1 + $0x560] sm:$0xff]  }
  0x7c   :  { %2668 = vmatprep.subr.bf16.mxu0 %v2932_v28  ;;  %v2980_v28 = vld [vmem:[%s3695_s1 + $0x5a8] sm:$0xff]  }
  0x7d   :  { %2689 = vmatpush3.bf16.msra.mxu1 %v2931_v29  ;;  %v2983_v29 = vld [vmem:[%s3695_s1 + $0x5e0] sm:$0xff]  }
  0x7e   :  { %2690 = vmatprep.subr.bf16.mxu1 %v2934_v30  ;;  %v2982_v30 = vld [vmem:[%s3695_s1 + $0x520] sm:$0xff]  }
  0x7f   :  { %2669 = vmatpush3.bf16.msra.mxu0 %v2933_v31  ;;  %v2985_v31 = vld [vmem:[%s3695_s1 + $0x558] sm:$0xff]  }
  0x80   :  { %2698 = vmatprep.subr.bf16.mxu0 %v2937_v33  ;;  %v2987_v33 = vld [vmem:[%s3695_s1 + $0x5d8] sm:$0xff]  }
  0x81   :  { %2691 = vmatpush3.bf16.msra.mxu1 %v2936_v34  ;;  %v2986_v34 = vld [vmem:[%s3695_s1 + $0x518] sm:$0xff]  }
  0x82   :  { %2061 = vmatmul.mubr.bf16.vlgmr.msra.gmra.mxu0 %v502_v32  ;;  %2720 = vmatprep.subr.bf16.mxu1 %v2939_v35  ;;  %v2984_v32 = vld [vmem:[%s3695_s1 + $0x5a0] sm:$0xff]   ;;  %v2989_v35 = vld [vmem:[%s3695_s1 + $0x550] sm:$0xff]  }
  0x83   :  { %2699 = vmatpush3.bf16.msra.mxu0 %v2938_v36  ;;  %2140 = vmatprep.mubr.bf16.mxu0 %v558_v6  ;;  %v2988_v36 = vld [vmem:[%s3695_s1 + $0x598] sm:$0xff]  }
  0x84   :  { %2101 = vmatmul.mubr.bf16.vlgmr.msra.gmra.mxu1 %v518_v37  ;;  %2700 = vmatprep.subr.bf16.mxu0 %v2941_v38  ;;  %v2991_v37 = vld [vmem:[%s3695_s1 + $0x5d0] sm:$0xff]  }
  0x85   :  { %2721 = vmatpush3.bf16.msra.mxu1 %v2940_v39  ;;  %2180 = vmatprep.mubr.bf16.mxu1 %v568_v10  ;;  %v2990_v38 = vld [vmem:[%s3695_s1 + $0x510] sm:$0xff]   ;;  %v2993_v39 = vld [vmem:[%s3695_s1 + $0x548] sm:$0xff]  }
  0x86   :  { %2722 = vmatprep.subr.bf16.mxu1 %v2943_v40  ;;  %v2992_v40 = vld [vmem:[%s3695_s1 + $0x590] sm:$0xff]  }
  0x87   :  { %2701 = vmatpush3.bf16.msra.mxu0 %v2942_v42  ;;  %v2995_v42 = vld [vmem:[%s3695_s1 + $0x5c8] sm:$0xff]  }
  0x88   :  { %2702 = vmatprep.subr.bf16.mxu0 %v2945_v43  ;;  %v2994_v43 = vld [vmem:[%s3695_s1 + $0x508] sm:$0xff]  }
  0x89   :  { %2723 = vmatpush3.bf16.msra.mxu1 %v2944_v44  ;;  %v2997_v44 = vld [vmem:[%s3695_s1 + $0x540] sm:$0xff]  }
  0x8a   :  { %2724 = vmatprep.subr.bf16.mxu1 %v2947_v45  ;;  %v2996_v45 = vld [vmem:[%s3695_s1 + $0x588] sm:$0xff]  }
  0x8b   :  { %2703 = vmatpush3.bf16.msra.mxu0 %v2946_v46  ;;  %v2999_v46 = vld [vmem:[%s3695_s1 + $0x5c0] sm:$0xff]  }
  0x8c   :  { %2704 = vmatprep.subr.bf16.mxu0 %v2949_v47  ;;  %v2998_v47 = vld [vmem:[%s3695_s1 + $0x500] sm:$0xff]  }
  0x8d   :  { %2725 = vmatpush3.bf16.msra.mxu1 %v2948_v48 }
  0x8e   :  { %2726 = vmatprep.subr.bf16.mxu1 %v2951_v49 }
  0x8f   :  { %2705 = vmatpush3.bf16.msra.mxu0 %v2950_v50 }
  0x90   :  { %2706 = vmatprep.subr.bf16.mxu0 %v2953_v51 }
  0x91   :  { %2727 = vmatpush3.bf16.msra.mxu1 %v2952_v52 }
  0x92   :  { %2728 = vmatprep.subr.bf16.mxu1 %v2955_v53 }
  0x93   :  { %2707 = vmatpush3.bf16.msra.mxu0 %v2954_v54 }
  0x94   :  { %2708 = vmatprep.subr.bf16.mxu0 %v2957_v55 }
  0x95   :  { %2729 = vmatpush3.bf16.msra.mxu1 %v2956_v56 }
  0x96   :  { %2730 = vmatprep.subr.bf16.mxu1 %v2959_v57 }
  0x97   :  { %2709 = vmatpush3.bf16.msra.mxu0 %v2958_v58 }
  0x98   :  { %2710 = vmatprep.subr.bf16.mxu0 %v2961_v59 }
  0x99   :  { %2731 = vmatpush3.bf16.msra.mxu1 %v2960_v61 }
  0x9a   :  { %2732 = vmatprep.subr.bf16.mxu1 %v2963_v0 }
  0x9b   :  { %2711 = vmatpush3.bf16.msra.mxu0 %v2962_v1 }
  0x9c   :  { %2712 = vmatprep.subr.bf16.mxu0 %v2965_v4 }
  0x9d   :  { %2733 = vmatpush3.bf16.msra.mxu1 %v2964_v5 }
  0x9e   :  { %2734 = vmatprep.subr.bf16.mxu1 %v2967_v8 }
  0x9f   :  { %2713 = vmatpush3.bf16.msra.mxu0 %v2966_v9 }
  0xa0   :  { %2742 = vmatprep.subr.bf16.mxu0 %v2969_v12 }
  0xa1   :  { %2735 = vmatpush3.bf16.msra.mxu1 %v2968_v13 }
  0xa2   :  { %2141 = vmatmul.mubr.bf16.vlgmr.msra.gmra.mxu0 %v544_v11  ;;  %2764 = vmatprep.subr.bf16.mxu1 %v2971_v15 }
  0xa3   :  { %2743 = vmatpush3.bf16.msra.mxu0 %v2970_v16  ;;  %2220 = vmatprep.mubr.bf16.mxu0 %v565_v14 }
  0xa4   :  { %2181 = vmatmul.mubr.bf16.vlgmr.msra.gmra.mxu1 %v566_v17  ;;  %2744 = vmatprep.subr.bf16.mxu0 %v2973_v18 }
  0xa5   :  { %2765 = vmatpush3.bf16.msra.mxu1 %v2972_v19  ;;  %2260 = vmatprep.mubr.bf16.mxu1 %v569_v20 }
  0xa6   :  { %2766 = vmatprep.subr.bf16.mxu1 %v2975_v21 }
  0xa7   :  { %2745 = vmatpush3.bf16.msra.mxu0 %v2974_v22 }
  0xa8   :  { %2746 = vmatprep.subr.bf16.mxu0 %v2977_v23 }
  0xa9   :  { %2767 = vmatpush3.bf16.msra.mxu1 %v2976_v24 }
  0xaa   :  { %2768 = vmatprep.subr.bf16.mxu1 %v2979_v25 }
  0xab   :  { %2747 = vmatpush3.bf16.msra.mxu0 %v2978_v26 }
  0xac   :  { %2748 = vmatprep.subr.bf16.mxu0 %v2981_v27 }
  0xad   :  { %2769 = vmatpush3.bf16.msra.mxu1 %v2980_v28 }
  0xae   :  { %2770 = vmatprep.subr.bf16.mxu1 %v2983_v29 }
  0xaf   :  { %2749 = vmatpush3.bf16.msra.mxu0 %v2982_v30 }
  0xb0   :  { %2750 = vmatprep.subr.bf16.mxu0 %v2985_v31 }
  0xb1   :  { %2771 = vmatpush3.bf16.msra.mxu1 %v2984_v32 }
  0xb2   :  { %2772 = vmatprep.subr.bf16.mxu1 %v2987_v33 }
  0xb3   :  { %2751 = vmatpush3.bf16.msra.mxu0 %v2986_v34 }
  0xb4   :  { %2752 = vmatprep.subr.bf16.mxu0 %v2989_v35 }
  0xb5   :  { %2773 = vmatpush3.bf16.msra.mxu1 %v2988_v36 }
  0xb6   :  { %2774 = vmatprep.subr.bf16.mxu1 %v2991_v37 }
  0xb7   :  { %2753 = vmatpush3.bf16.msra.mxu0 %v2990_v38 }
  0xb8   :  { %2754 = vmatprep.subr.bf16.mxu0 %v2993_v39 }
  0xb9   :  { %2775 = vmatpush3.bf16.msra.mxu1 %v2992_v40 }
  0xba   :  { %2776 = vmatprep.subr.bf16.mxu1 %v2995_v42 }
  0xbb   :  { %2755 = vmatpush3.bf16.msra.mxu0 %v2994_v43 }
  0xbc   :  { %8 = vsyncpa [#allocation3], 0  ;;  %2756 = vmatprep.subr.bf16.mxu0 %v2997_v44  ;;  %v551_v48 = vrot.slane %v3552_v3, %v3157_v41  ;;  %v3001_v49 = vld [vmem:[%s3695_s1 + $0x580] sm:$0xff]   ;;  %v3002_v50 = vld [vmem:[%s3695_s1 + $0x618] sm:$0xff]   ;;  %v3029_v51 = vmov 0.0   ;;  %vm3030_vm0 = vmmov 0  }
  0xbd   :  { %2777 = vmatpush3.bf16.msra.mxu1 %v2996_v45  ;;  %v3003_v53 = vld [vmem:[%s3695_s1 + $0x610] sm:$0xff]   ;;  %v3004_v54 = vld [vmem:[%s3695_s1 + $0x608] sm:$0xff]   ;;  %v3005_v55 = vld [vmem:[%s3695_s1 + $0x600] sm:$0xff]   ;;  %vm1784_vm1 = vcmask 523264  }
  0xbe   :  { %2778 = vmatprep.subr.bf16.mxu1 %v2999_v46  ;;  %v567_v52 = vcombine.high %v551_v48, %v551_v48  ;;  %v2324_v56 = vld.sshfl [vmem:[%s3694_s0 + $0x18] sm:$0x1 pattern:$0x75316420]  ;;  %v2323_v59 = vld [vmem:[%s3696_s2] ss:$0 sm:$0xff] }
  0xbf   :  { %2757 = vmatpush3.bf16.msra.mxu0 %v2998_v47  ;;  %v583_v57 = vrot.slane %v2324_v56, %v3157_v41  ;;  %s3031_s0 = smov [#allocation2]  }
  0xc0   :  { %2791 = vmatprep.subr.bf16.mxu0 %v3029_v51  ;;  %s2315_s1 = sshll.u32 %s3031_s0, 4  ;;  %s2316_s1 = int_to_ptr.vmem [resolvable:$true] %s2315_s1 }
  0xc1   :  { %2779 = vmatpush3.bf16.msra.mxu1 %v3001_v49  ;;  %s3006_s2 = scalar_lea.vmem %s2316_s1, 32  ;;  %p3011_p1 = scmp.lt.s32.totalorder %s2316_s1, %s2316_s1 }
  0xc2   :  { %2221 = vmatmul.mubr.bf16.vlgmr.msra.gmra.mxu0 %v551_v48  ;;  %p3007_p0 = scmp.ne.s32.totalorder %s2316_s1, %s3006_s2  ;;  %p3012_p2 = scmp.lt.s32.totalorder %s3006_s2, %s3006_s2 }
  0xc3   :  { %2792 = vmatpush3.bf16.msra.mxu0 %v3002_v50  ;;  %2799 = vmatprep.mubr.msk.bf16.mxu0 %vm3030_vm0, %v3029_v51 }
  0xc4   :  { %2261 = vmatmul.mubr.bf16.vlgmr.msra.gmra.mxu1 %v567_v52  ;;  %2793 = vmatprep.subr.bf16.mxu0 %v3029_v51  ;;  %p3013_p3 = por %p3012_p2, %p3011_p1 }
  0xc6   :  { %p3014_p4 = pnand %p3013_p3, %p3007_p0 }
  0xc7   :  { %2794 = vmatpush3.bf16.msra.mxu0 %v3003_v53 }
  0xc8   :  { %2795 = vmatprep.subr.bf16.mxu0 %v3029_v51 }
  0xcb   :  { %2796 = vmatpush3.bf16.msra.mxu0 %v3004_v54 }
  0xcc   :  { %2797 = vmatprep.subr.bf16.mxu0 %v3029_v51 }
  0xcf   :  { %2798 = vmatpush3.bf16.msra.mxu0 %v3005_v55 }
  0xd2   :  { %2800 = vmatmul.mubr.msk.bf16.vlgmr.msra.gmra.mxu0 %vm1784_vm1, %v583_v57 }
  0xe2   :  { %v2538_v58 = vpop.f32.mrf.mxu0 }
  0xe4   :  { %v2539_v60 = vpop.f32.mrf.mxu0  ;;  %v2560_v61 = vpop.f32.mrf.mxu1 }
  0xe5   :  { %v2540_v62 = vadd.f32 %v2539_v60, %v2538_v58 }
  0xe6   :  { %v2541_v63 = vpop.f32.mrf.mxu0  ;;  %v2561_v0 = vpop.f32.mrf.mxu1 }
  0xe7   :  { %v1823_v1 = vadd.f32 %v2540_v62, %v2323_v59  ;;  %v2562_v2 = vadd.f32 %v2561_v0, %v2560_v61 }
  0xe8   :  { %v2542_v3 = vpop.f32.mrf.mxu0  ;;  %v2563_v4 = vpop.f32.mrf.mxu1 }
  0xe9   :  { %v1863_v5 = vadd.f32 %v2562_v2, %v1823_v1 }
  0xea   :  { %v2564_v6 = vpop.f32.mrf.mxu1 }
 0x102   :  { %v2582_v41 = vpop.f32.mrf.mxu0 }
 0x104   :  { %v2583_v7 = vpop.f32.mrf.mxu0  ;;  %v2604_v8 = vpop.f32.mrf.mxu1 }
 0x105   :  { %v2584_v9 = vadd.f32 %v2583_v7, %v2582_v41 }
 0x106   :  { %v2585_v10 = vpop.f32.mrf.mxu0  ;;  %v2605_v11 = vpop.f32.mrf.mxu1 }
 0x107   :  { %v1903_v12 = vadd.f32 %v2584_v9, %v1863_v5  ;;  %v2606_v13 = vadd.f32 %v2605_v11, %v2604_v8 }
 0x108   :  { %v2586_v14 = vpop.f32.mrf.mxu0  ;;  %v2607_v15 = vpop.f32.mrf.mxu1 }
 0x109   :  { %v1943_v16 = vadd.f32 %v2606_v13, %v1903_v12 }
 0x10a   :  { %v2608_v17 = vpop.f32.mrf.mxu1 }
 0x122   :  { %v2626_v18 = vpop.f32.mrf.mxu0 }
 0x124   :  { %v2627_v19 = vpop.f32.mrf.mxu0  ;;  %v2648_v20 = vpop.f32.mrf.mxu1 }
 0x125   :  { %v2628_v21 = vadd.f32 %v2627_v19, %v2626_v18 }
 0x126   :  { %v2629_v22 = vpop.f32.mrf.mxu0  ;;  %v2649_v23 = vpop.f32.mrf.mxu1 }
 0x127   :  { %v1983_v24 = vadd.f32 %v2628_v21, %v1943_v16  ;;  %v2650_v25 = vadd.f32 %v2649_v23, %v2648_v20 }
 0x128   :  { %v2630_v26 = vpop.f32.mrf.mxu0  ;;  %v2651_v27 = vpop.f32.mrf.mxu1 }
 0x129   :  { %v2023_v28 = vadd.f32 %v2650_v25, %v1983_v24 }
 0x12a   :  { %v2652_v29 = vpop.f32.mrf.mxu1 }
 0x142   :  { %v2670_v30 = vpop.f32.mrf.mxu0 }
 0x144   :  { %v2671_v31 = vpop.f32.mrf.mxu0  ;;  %v2692_v32 = vpop.f32.mrf.mxu1 }
 0x145   :  { %v2672_v33 = vadd.f32 %v2671_v31, %v2670_v30 }
 0x146   :  { %v2673_v34 = vpop.f32.mrf.mxu0  ;;  %v2693_v35 = vpop.f32.mrf.mxu1 }
 0x147   :  { %v2063_v36 = vadd.f32 %v2672_v33, %v2023_v28  ;;  %v2694_v37 = vadd.f32 %v2693_v35, %v2692_v32 }
 0x148   :  { %v2674_v38 = vpop.f32.mrf.mxu0  ;;  %v2695_v39 = vpop.f32.mrf.mxu1 }
 0x149   :  { %v2103_v40 = vadd.f32 %v2694_v37, %v2063_v36 }
 0x14a   :  { %v2696_v42 = vpop.f32.mrf.mxu1 }
 0x162   :  { %v2714_v43 = vpop.f32.mrf.mxu0 }
 0x164   :  { %v2715_v44 = vpop.f32.mrf.mxu0  ;;  %v2736_v45 = vpop.f32.mrf.mxu1 }
 0x165   :  { %v2716_v52 = vadd.f32 %v2715_v44, %v2714_v43 }
 0x166   :  { %v2717_v46 = vpop.f32.mrf.mxu0  ;;  %v2737_v47 = vpop.f32.mrf.mxu1 }
 0x167   :  { %v2143_v57 = vadd.f32 %v2716_v52, %v2103_v40  ;;  %v2738_v58 = vadd.f32 %v2737_v47, %v2736_v45 }
 0x168   :  { %v2718_v48 = vpop.f32.mrf.mxu0  ;;  %v2739_v49 = vpop.f32.mrf.mxu1 }
 0x169   :  { %v2183_v63 = vadd.f32 %v2738_v58, %v2143_v57 }
 0x16a   :  { %v2740_v50 = vpop.f32.mrf.mxu1 }
 0x182   :  { %v2758_v51 = vpop.f32.mrf.mxu0 }
 0x184   :  { %v2759_v53 = vpop.f32.mrf.mxu0  ;;  %v2780_v54 = vpop.f32.mrf.mxu1 }
 0x185   :  { %v2760_v61 = vadd.f32 %v2759_v53, %v2758_v51 }
 0x186   :  { %v2761_v55 = vpop.f32.mrf.mxu0  ;;  %v2781_v56 = vpop.f32.mrf.mxu1 }
 0x187   :  { %v2223_v0 = vadd.f32 %v2760_v61, %v2183_v63  ;;  %v2782_v1 = vadd.f32 %v2781_v56, %v2780_v54 }
 0x188   :  { %v2762_v59 = vpop.f32.mrf.mxu0  ;;  %v2783_v60 = vpop.f32.mrf.mxu1 }
 0x189   :  { %v2263_v2 = vadd.f32 %v2782_v1, %v2223_v0 }
 0x18a   :  { %v2784_v62 = vpop.f32.mrf.mxu1 }
 0x192   :  { %v2302_v3 = vpop.f32.mrf.mxu0 }
 0x193   :  { %v2303_v4 = vadd.f32 %v2302_v3, %v2263_v2 }
 0x194   :  { %v2801_v5 = vpop.f32.mrf.mxu0 }
 0x195   :  { %2308 = vst [vmem:[#allocation2] sm:$0x3] %v2303_v4 }
 0x196   :  { %v2305_v6 = vpop.f32.mrf.mxu0 }
 0x197   :  { %3017 = shalt.err (!%p3014_p4)
}
 0x198   :  { %2318 = dma.vmem_to_hbm [thread:$0]  %s2316_s1, 32, %s3697_s3, [#allocation3]   ;;  %v2802_v41 = vpop.f32.mrf.mxu0 }
 0x199   :  { %3026 = dma.done.wait [#allocation3], 32  }
 0x19a   :  { %3027 = vsyncadd [#allocation3], 4294967264 }
 0x19b   :  { %2322 = vsyncpa [#allocation3], 1 }

</bundles_post_ra>
